<compile_context>
chip_gen: v5e
topology: v5e:2x2
jax: 0.10.0
libtpu: 0.0.40
codegen_flags: <defaults>
</compile_context>

<pallas_src>
import numpy as np
import jax
import jax.numpy as jnp
from jax.experimental import pallas as pl
from jax.experimental.pallas import tpu as pltpu


def _ceil8(n):
    return ((n + 7) // 8) * 8


# ----------------------------------------------------------------------------- kernel
def make_deepconvnet_kernel(Bt, n_later, ft, pool_size, pool_stride):
    assert pool_size == pool_stride, "DeepConvNet uses pool_size == pool_stride"

    def elu(v):
        # exp(v)-1 in the unselected branch is harmless under select semantics.
        return jnp.where(v > 0.0, v, jnp.exp(v) - 1.0)

    def pool(v, sel, stride_rows):
        # v: (Bt*stride_rows, f) row-stacked, trial-major, per-trial row stride
        # `stride_rows`; rows past each trial's valid extent are never consumed.
        # sel: (tpool, span) constant 0/1 stride-downsample matrix (VMEM input).
        tpool, span = sel.shape
        glob = (Bt - 1) * stride_rows + span
        u = v[0:glob, :]
        for p in range(1, pool_size):                 # window max on the VPU
            u = jnp.maximum(u, v[p:p + glob, :])
        # per-trial stride-downsample: one exact 0/1 selection GEMM each
        return [jnp.dot(sel, u[b * stride_rows:b * stride_rows + span, :],
                        preferred_element_type=jnp.float32)
                for b in range(Bt)]

    def kernel(*refs):
        x_ref, w1_ref, b1_ref, sel1_ref = refs[0:4]
        blk = [(refs[4 + 3 * j], refs[5 + 3 * j], refs[6 + 3 * j])
               for j in range(n_later)]
        wc_ref = refs[4 + 3 * n_later]
        bc_ref = refs[5 + 3 * n_later]
        out_ref = refs[6 + 3 * n_later]
        col_ref = refs[7 + 3 * n_later]               # VMEM re-stacking scratch

        # ---- conv1 (temporal+spatial fused, BN folded): one batched GEMM over
        #      the pre-im2col'd rows of all Bt trials -> ELU -> MaxPool(time).
        S0 = x_ref.shape[0] // Bt                     # padded per-trial stride
        v = jnp.dot(x_ref[...], w1_ref[...],
                    preferred_element_type=jnp.float32) + b1_ref[...]
        h_list = pool(elu(v), sel1_ref[...], S0)

        # ---- later blocks: Dropout(id) -> conv (BN folded, tap-sum GEMMs with
        #      M = Bt*ceil8(t) rows) -> ELU -> MaxPool(time)
        for (wb_ref, bb_ref, selb_ref) in blk:
            tin, fin = h_list[0].shape
            S = _ceil8(tin)
            # aligned-row, lane-offset-0 stores re-stack the Bt trials
            for b in range(Bt):
                col_ref[b * S:b * S + tin, 0:fin] = h_list[b]
            acc = None
            for k in range(ft):
                rows_k = col_ref[k:k + Bt * S, 0:fin]
                part = jnp.dot(rows_k, wb_ref[k],
                               preferred_element_type=jnp.float32)
                acc = part if acc is None else acc + part
            h_list = pool(elu(acc + bb_ref[...]), selb_ref[...], S)

        # ---- classifier conv (sum over the tiny t_last) + LogSoftmax(dim=1)
        t_last = wc_ref.shape[0]
        for b in range(Bt):
            hb = h_list[b]                            # (t_last, f_last)
            acc = None
            for t in range(t_last):
                part = jnp.dot(hb[t:t + 1, :], wc_ref[t],
                               preferred_element_type=jnp.float32)
                acc = part if acc is None else acc + part
            logit = acc + bc_ref[...]
            m = jnp.max(logit, axis=1, keepdims=True)
            z = logit - m
            lse = jnp.log(jnp.sum(jnp.exp(z), axis=1, keepdims=True))
            out_ref[b] = (z - lse).astype(out_ref.dtype)

    return kernel


# ----------------------------------------------------------------------------- wrapper
def deepconvnet_forward(x, params, *, pool_size, pool_stride, batch_tile=None):
    w1, b1, w2 = params["w1"], params["b1"], params["w2"]   # (ft,F), (1,F), (C,F,F)
    s1, sh1 = params["s1"], params["sh1"]                    # eval-BN scale/shift
    ft, F = w1.shape
    C = w2.shape[0]
    B, T, Cx = x.shape
    assert Cx == C
    assert pool_size == pool_stride
    assert ft <= T, "Temporal filter size error"

    # batch tile per grid step: largest divisor of B that keeps >= 2 grid steps
    # (so dimension_semantics=("parallel",) can shard across both v7x TCs).
    if batch_tile is None:
        batch_tile = 1
        for d in range(1, B + 1):
            if B % d == 0 and B // d >= 2:
                batch_tile = d
    Bt = batch_tile
    assert B % Bt == 0

    # conv1: fuse temporal+spatial convs and fold eval-BN into one GEMM weight/bias.
    w1_fused = jnp.einsum("kf,cfg->kcg", w1, w2).reshape(ft * C, F) * s1
    b1_fused = jnp.einsum("f,cfg->g", b1[0], w2).reshape(1, F) * s1 + sh1

    # wrapper-side im2col for layer 1 (layout plumbing only): rows zero-padded
    # to a multiple of 8 per trial so the kernel's row blocks stay tile-aligned.
    T1 = T - ft + 1
    assert T1 >= 1
    T1p = _ceil8(T1)
    cols = jnp.concatenate([x[:, k:k + T1, :] for k in range(ft)], axis=2)
    cols = jnp.pad(cols, ((0, 0), (0, T1p - T1), (0, 0)))
    x_rows = cols.reshape(B * T1p, ft * C)

    def sel_matrix(tout):
        tpool = (tout - pool_size) // pool_stride + 1
        assert tpool >= 1, "pooling would produce an empty time axis"
        span = (tpool - 1) * pool_stride + 1
        s = (np.arange(span)[None, :] ==
             (np.arange(tpool) * pool_stride)[:, None]).astype(np.float32)
        return jnp.asarray(s), tpool

    sel1, t_cur = sel_matrix(T1)
    inputs = [x_rows, w1_fused, b1_fused, sel1]

    scratch_rows, scratch_cols = 8, 128
    for wb, sb, shb in params["blocks"]:                     # wb: (ft, Fin, Fout)
        fin = wb.shape[1]
        S = _ceil8(t_cur)
        scratch_rows = max(scratch_rows, Bt * S + ft)
        scratch_cols = max(scratch_cols, fin)
        tconv = t_cur - ft + 1
        assert tconv >= 1, "conv would produce an empty time axis"
        selb, t_cur = sel_matrix(tconv)
        inputs += [wb * sb, shb, selb]                       # BN folded into weight
    scratch_rows = _ceil8(scratch_rows)

    wc = params["wc"]                                        # (t_last, F_last, ncls)
    t_last, f_last, ncls = wc.shape
    assert t_last == t_cur, "classifier time extent mismatch"
    inputs += [wc, params["bc"]]

    n_later = len(params["blocks"])
    kernel = make_deepconvnet_kernel(Bt, n_later, ft, pool_size, pool_stride)

    def const_spec(a):
        zero = (0,) * a.ndim
        return pl.BlockSpec(a.shape, lambda i, _z=zero: _z)  # weights stay resident

    in_specs = [pl.BlockSpec((Bt * T1p, ft * C), lambda i: (i, 0))]
    in_specs += [const_spec(a) for a in inputs[1:]]

    out = pl.pallas_call(
        kernel,
        out_shape=jax.ShapeDtypeStruct((B, 1, ncls), jnp.float32),
        grid=(B // Bt,),
        in_specs=in_specs,
        out_specs=pl.BlockSpec((Bt, 1, ncls), lambda i: (i, 0, 0)),
        scratch_shapes=[pltpu.VMEM((scratch_rows, scratch_cols), jnp.float32)],
        compiler_params=pltpu.CompilerParams(
            dimension_semantics=("parallel",),      # shard steps across TCs (v7x)
            vmem_limit_bytes=32 * 1024 * 1024,
        ),
    )(*inputs)
    return out[:, 0, :]


# ------------------------------------------------------------------- parameter setup
def _xavier_uniform(key, shape, fan_in, fan_out):
    bound = float(np.sqrt(6.0 / (fan_in + fan_out)))
    return jax.random.uniform(key, shape, jnp.float32, -bound, bound)


def _renorm_maxnorm(w, maxnorm):
    # torch.renorm(p=2, dim=0, maxnorm) over the output-filter dimension.
    flat = w.reshape(w.shape[0], -1)
    n = jnp.sqrt(jnp.sum(flat * flat, axis=1, keepdims=True))
    scale = jnp.where(n > maxnorm, maxnorm / (n + 1e-7), 1.0)
    return (flat * scale).reshape(w.shape)


def init_params(key, n_timepoints, n_channels, n_classes, n_filters,
                filter_size_time, pool_size, pool_stride, n_conv_blocks):
    eps = 1e-5
    F = n_filters
    ft = filter_size_time
    keys = jax.random.split(key, 4 + 2 * n_conv_blocks)

    # conv1a: temporal conv, torch weight (F, 1, ft, 1) + bias (F,)
    w1_t = _xavier_uniform(keys[0], (F, 1, ft, 1), fan_in=ft, fan_out=F * ft)
    w1_t = _renorm_maxnorm(w1_t, 2.0)
    b1 = jax.random.uniform(keys[1], (F,), jnp.float32,
                            -1.0 / np.sqrt(ft), 1.0 / np.sqrt(ft))
    # conv1b: spatial conv, torch weight (F, F, 1, C), no bias
    w2_t = _xavier_uniform(keys[2], (F, F, 1, n_channels),
                           fan_in=F * n_channels, fan_out=F * n_channels)
    w2_t = _renorm_maxnorm(w2_t, 2.0)

    def bn_scale_shift(nf):
        # eval BatchNorm with gamma=1, beta=0, running_mean=0, running_var=1
        s = jnp.full((1, nf), 1.0 / np.sqrt(1.0 + eps), jnp.float32)
        sh = jnp.zeros((1, nf), jnp.float32)
        return s, sh

    s1, sh1 = bn_scale_shift(F)

    outlen = n_timepoints - ft + 1
    outlen = (outlen - pool_size) // pool_stride + 1

    blocks = []
    f_prev = F
    kidx = 3
    for _ in range(n_conv_blocks - 1):
        f_now = 2 * f_prev
        wb_t = _xavier_uniform(keys[kidx], (f_now, f_prev, ft, 1),
                               fan_in=f_prev * ft, fan_out=f_now * ft)
        kidx += 1
        wb_t = _renorm_maxnorm(wb_t, 2.0)
        sb, shb = bn_scale_shift(f_now)
        # kernel layout (ft, Fin, Fout)
        blocks.append((jnp.transpose(wb_t[:, :, :, 0], (2, 1, 0)), sb, shb))
        f_prev = f_now
        outlen = outlen - ft + 1
        outlen = (outlen - pool_size) // pool_stride + 1

    # classifier conv: torch weight (n_classes, f_prev, outlen, 1) + bias
    wc_t = _xavier_uniform(keys[kidx], (n_classes, f_prev, outlen, 1),
                           fan_in=f_prev * outlen, fan_out=n_classes * outlen)
    kidx += 1
    wc_t = _renorm_maxnorm(wc_t, 0.5)
    bc = jax.random.uniform(keys[kidx], (n_classes,), jnp.float32,
                            -1.0 / np.sqrt(f_prev * outlen),
                            1.0 / np.sqrt(f_prev * outlen))

    return {
        "w1": jnp.transpose(w1_t[:, 0, :, 0], (1, 0)),      # (ft, F)
        "b1": b1.reshape(1, F),
        "w2": jnp.transpose(w2_t[:, :, 0, :], (2, 1, 0)),   # (C, Fin, Fout)
        "s1": s1, "sh1": sh1,
        "blocks": blocks,
        "wc": jnp.transpose(wc_t[:, :, :, 0], (2, 1, 0)),   # (T_last, F_last, ncls)
        "bc": bc.reshape(1, n_classes),
    }


# -------------------------------------------------------------- pure-JAX reference
def reference_forward(x, params, *, ft, ps, pst):
    w1, b1, w2 = params["w1"], params["b1"][0], params["w2"]
    s1, sh1 = params["s1"][0], params["sh1"][0]
    B, T, C = x.shape
    T1 = T - ft + 1

    out1 = jnp.zeros((B, T1, C, w1.shape[1]), jnp.float32)
    for k in range(ft):
        out1 = out1 + x[:, k:k + T1, :, None] * w1[k][None, None, None, :]
    out1 = out1 + b1[None, None, None, :]
    h = jnp.einsum("btcf,cfg->btg", out1, w2)

    def post(v, s, sh):
        v = v * s[None, None, :] + sh[None, None, :]
        v = jnp.where(v > 0, v, jnp.exp(v) - 1.0)
        tin = v.shape[1]
        tout = (tin - ps) // pst + 1
        v = v[:, :tout * pst, :].reshape(B, tout, pst, -1).max(axis=2)
        return v

    h = post(h, s1, sh1)
    for wb, sb, shb in params["blocks"]:
        tin = h.shape[1]
        tout = tin - ft + 1
        a = jnp.zeros((B, tout, wb.shape[2]), jnp.float32)
        for k in range(ft):
            a = a + jnp.einsum("btf,fg->btg", h[:, k:k + tout, :], wb[k])
        h = post(a, sb[0], shb[0])

    logits = params["bc"] + jnp.einsum("btf,tfc->bc", h, params["wc"])
    return jax.nn.log_softmax(logits, axis=1)


# --------------------------------------------------------------------------- main
if __name__ == "__main__":
    # Small, consistent shapes:
    #   n_timepoints=32, n_channels=4, n_classes=4, n_filters=8,
    #   filter_size_time=3, pool 2/2, n_conv_blocks=3  -> outlen_time = 2
    # B=8 so the default batch tile is 4 trials/step with a 2-step grid.
    B, T, C, NCLS = 8, 32, 4, 4
    F, FT, PS, PST, NBLK = 8, 3, 2, 2, 3

    key = jax.random.PRNGKey(0)
    kx, kp = jax.random.split(key)
    # torch input would be (B, 1, T, C); kernel layout is (B, T, C)
    x = jax.random.normal(kx, (B, T, C), jnp.float32)
    params = init_params(kp, T, C, NCLS, F, FT, PS, PST, NBLK)

    out = deepconvnet_forward(x, params, pool_size=PS, pool_stride=PST)
    out = jax.block_until_ready(out)

    ref = reference_forward(x, params, ft=FT, ps=PS, pst=PST)
    assert out.shape == (B, NCLS)
    np.testing.assert_allclose(np.asarray(out), np.asarray(ref),
                               atol=1e-3, rtol=1e-3)
    print("KERNEL_OK")
</pallas_src>

<mosaic_0001>
module attributes {stable_mosaic.version = 11 : i64} {
  func.func @kernel(%arg0: i32, %arg1: memref<128x12xf32, #tpu.memory_space<vmem>>, %arg2: memref<12x8xf32, #tpu.memory_space<vmem>>, %arg3: memref<1x8xf32, #tpu.memory_space<vmem>>, %arg4: memref<15x29xf32, #tpu.memory_space<vmem>>, %arg5: memref<3x8x16xf32, #tpu.memory_space<vmem>>, %arg6: memref<1x16xf32, #tpu.memory_space<vmem>>, %arg7: memref<6x11xf32, #tpu.memory_space<vmem>>, %arg8: memref<3x16x32xf32, #tpu.memory_space<vmem>>, %arg9: memref<1x32xf32, #tpu.memory_space<vmem>>, %arg10: memref<2x3xf32, #tpu.memory_space<vmem>>, %arg11: memref<2x32x4xf32, #tpu.memory_space<vmem>>, %arg12: memref<1x4xf32, #tpu.memory_space<vmem>>, %arg13: memref<4x1x4xf32, #tpu.memory_space<vmem>>, %arg14: memref<72x128xf32, #tpu.memory_space<vmem>>) attributes {dimension_semantics = [#tpu.dimension_semantics<parallel>], iteration_bounds = array<i64: 2>, scalar_prefetch = 0 : i64, scratch_operands = 1 : i64, tpu.core_type = #tpu.core_type<tc>, window_params = [{transform_indices = @transform_0, window_bounds = array<i64: 128, 12>}, {pipeline_mode = #tpu.pipeline_mode<synchronous>, transform_indices = @transform_1, window_bounds = array<i64: 12, 8>}, {pipeline_mode = #tpu.pipeline_mode<synchronous>, transform_indices = @transform_2, window_bounds = array<i64: 1, 8>}, {pipeline_mode = #tpu.pipeline_mode<synchronous>, transform_indices = @transform_3, window_bounds = array<i64: 15, 29>}, {pipeline_mode = #tpu.pipeline_mode<synchronous>, transform_indices = @transform_4, window_bounds = array<i64: 3, 8, 16>}, {pipeline_mode = #tpu.pipeline_mode<synchronous>, transform_indices = @transform_5, window_bounds = array<i64: 1, 16>}, {pipeline_mode = #tpu.pipeline_mode<synchronous>, transform_indices = @transform_6, window_bounds = array<i64: 6, 11>}, {pipeline_mode = #tpu.pipeline_mode<synchronous>, transform_indices = @transform_7, window_bounds = array<i64: 3, 16, 32>}, {pipeline_mode = #tpu.pipeline_mode<synchronous>, transform_indices = @transform_8, window_bounds = array<i64: 1, 32>}, {pipeline_mode = #tpu.pipeline_mode<synchronous>, transform_indices = @transform_9, window_bounds = array<i64: 2, 3>}, {pipeline_mode = #tpu.pipeline_mode<synchronous>, transform_indices = @transform_10, window_bounds = array<i64: 2, 32, 4>}, {pipeline_mode = #tpu.pipeline_mode<synchronous>, transform_indices = @transform_11, window_bounds = array<i64: 1, 4>}, {transform_indices = @transform_12, window_bounds = array<i64: 4, 1, 4>}]} {
    %c0 = arith.constant 0 : index
    %c0_0 = arith.constant 0 : index
    %0 = vector.load %arg1[%c0, %c0_0] : memref<128x12xf32, #tpu.memory_space<vmem>>, vector<128x12xf32>
    %c0_1 = arith.constant 0 : index
    %c0_2 = arith.constant 0 : index
    %1 = vector.load %arg2[%c0_1, %c0_2] : memref<12x8xf32, #tpu.memory_space<vmem>>, vector<12x8xf32>
    %cst = arith.constant dense<0.000000e+00> : vector<128x8xf32>
    %2 = tpu.matmul %0, %1, %cst {dimension_numbers = #tpu.dot_dimension_numbers<[1], [0], [0], [1], [0, 0, 1, 1], [], []>} : vector<128x12xf32>, vector<12x8xf32>, vector<128x8xf32> -> vector<128x8xf32>
    %c0_3 = arith.constant 0 : index
    %c0_4 = arith.constant 0 : index
    %3 = vector.load %arg3[%c0_3, %c0_4] : memref<1x8xf32, #tpu.memory_space<vmem>>, vector<1x8xf32>
    %4 = vector.broadcast %3 : vector<1x8xf32> to vector<128x8xf32>
    %5 = arith.addf %2, %4 : vector<128x8xf32>
    %cst_5 = arith.constant 0.000000e+00 : f32
    %6 = vector.broadcast %cst_5 : f32 to vector<128x8xf32>
    %7 = arith.cmpf ogt, %5, %6 : vector<128x8xf32>
    %8 = math.exp %5 : vector<128x8xf32>
    %cst_6 = arith.constant 1.000000e+00 : f32
    %9 = vector.broadcast %cst_6 : f32 to vector<128x8xf32>
    %10 = arith.subf %8, %9 : vector<128x8xf32>
    %11 = arith.select %7, %5, %10 : vector<128x8xi1>, vector<128x8xf32>
    %c0_7 = arith.constant 0 : index
    %c0_8 = arith.constant 0 : index
    %12 = vector.load %arg4[%c0_7, %c0_8] : memref<15x29xf32, #tpu.memory_space<vmem>>, vector<15x29xf32>
    %13 = vector.extract_strided_slice %11 {offsets = [0, 0], sizes = [125, 8], strides = [1, 1]} : vector<128x8xf32> to vector<125x8xf32>
    %14 = vector.extract_strided_slice %11 {offsets = [1, 0], sizes = [125, 8], strides = [1, 1]} : vector<128x8xf32> to vector<125x8xf32>
    %15 = arith.maximumf %13, %14 : vector<125x8xf32>
    %16 = vector.extract_strided_slice %15 {offsets = [0, 0], sizes = [29, 8], strides = [1, 1]} : vector<125x8xf32> to vector<29x8xf32>
    %cst_9 = arith.constant dense<0.000000e+00> : vector<15x8xf32>
    %17 = tpu.matmul %12, %16, %cst_9 {dimension_numbers = #tpu.dot_dimension_numbers<[1], [0], [0], [1], [0, 0, 1, 1], [], []>} : vector<15x29xf32>, vector<29x8xf32>, vector<15x8xf32> -> vector<15x8xf32>
    %18 = vector.extract_strided_slice %15 {offsets = [32, 0], sizes = [29, 8], strides = [1, 1]} : vector<125x8xf32> to vector<29x8xf32>
    %cst_10 = arith.constant dense<0.000000e+00> : vector<15x8xf32>
    %19 = tpu.matmul %12, %18, %cst_10 {dimension_numbers = #tpu.dot_dimension_numbers<[1], [0], [0], [1], [0, 0, 1, 1], [], []>} : vector<15x29xf32>, vector<29x8xf32>, vector<15x8xf32> -> vector<15x8xf32>
    %20 = vector.extract_strided_slice %15 {offsets = [64, 0], sizes = [29, 8], strides = [1, 1]} : vector<125x8xf32> to vector<29x8xf32>
    %cst_11 = arith.constant dense<0.000000e+00> : vector<15x8xf32>
    %21 = tpu.matmul %12, %20, %cst_11 {dimension_numbers = #tpu.dot_dimension_numbers<[1], [0], [0], [1], [0, 0, 1, 1], [], []>} : vector<15x29xf32>, vector<29x8xf32>, vector<15x8xf32> -> vector<15x8xf32>
    %22 = vector.extract_strided_slice %15 {offsets = [96, 0], sizes = [29, 8], strides = [1, 1]} : vector<125x8xf32> to vector<29x8xf32>
    %cst_12 = arith.constant dense<0.000000e+00> : vector<15x8xf32>
    %23 = tpu.matmul %12, %22, %cst_12 {dimension_numbers = #tpu.dot_dimension_numbers<[1], [0], [0], [1], [0, 0, 1, 1], [], []>} : vector<15x29xf32>, vector<29x8xf32>, vector<15x8xf32> -> vector<15x8xf32>
    %c0_13 = arith.constant 0 : index
    %c0_14 = arith.constant 0 : index
    %24 = vector.load %arg14[%c0_13, %c0_14] : memref<72x128xf32, #tpu.memory_space<vmem>>, vector<15x8xf32>
    tpu.vector_store %arg14[%c0_13, %c0_14], %17 {strides = array<i32>} : memref<72x128xf32, #tpu.memory_space<vmem>>, vector<15x8xf32>,
    %c16 = arith.constant 16 : index
    %c0_15 = arith.constant 0 : index
    %25 = vector.load %arg14[%c16, %c0_15] : memref<72x128xf32, #tpu.memory_space<vmem>>, vector<15x8xf32>
    tpu.vector_store %arg14[%c16, %c0_15], %19 {strides = array<i32>} : memref<72x128xf32, #tpu.memory_space<vmem>>, vector<15x8xf32>,
    %c32 = arith.constant 32 : index
    %c0_16 = arith.constant 0 : index
    %26 = vector.load %arg14[%c32, %c0_16] : memref<72x128xf32, #tpu.memory_space<vmem>>, vector<15x8xf32>
    tpu.vector_store %arg14[%c32, %c0_16], %21 {strides = array<i32>} : memref<72x128xf32, #tpu.memory_space<vmem>>, vector<15x8xf32>,
    %c48 = arith.constant 48 : index
    %c0_17 = arith.constant 0 : index
    %27 = vector.load %arg14[%c48, %c0_17] : memref<72x128xf32, #tpu.memory_space<vmem>>, vector<15x8xf32>
    tpu.vector_store %arg14[%c48, %c0_17], %23 {strides = array<i32>} : memref<72x128xf32, #tpu.memory_space<vmem>>, vector<15x8xf32>,
    %c0_18 = arith.constant 0 : index
    %c0_19 = arith.constant 0 : index
    %28 = vector.load %arg14[%c0_18, %c0_19] : memref<72x128xf32, #tpu.memory_space<vmem>>, vector<64x8xf32>
    %c0_20 = arith.constant 0 : index
    %c0_21 = arith.constant 0 : index
    %c0_22 = arith.constant 0 : index
    %29 = vector.load %arg5[%c0_20, %c0_21, %c0_22] : memref<3x8x16xf32, #tpu.memory_space<vmem>>, vector<1x8x16xf32>
    %30 = vector.shape_cast %29 : vector<1x8x16xf32> to vector<8x16xf32>
    %cst_23 = arith.constant dense<0.000000e+00> : vector<64x16xf32>
    %31 = tpu.matmul %28, %30, %cst_23 {dimension_numbers = #tpu.dot_dimension_numbers<[1], [0], [0], [1], [0, 0, 1, 1], [], []>} : vector<64x8xf32>, vector<8x16xf32>, vector<64x16xf32> -> vector<64x16xf32>
    %c1 = arith.constant 1 : index
    %c0_24 = arith.constant 0 : index
    %32 = vector.load %arg14[%c1, %c0_24] : memref<72x128xf32, #tpu.memory_space<vmem>>, vector<64x8xf32>
    %c1_25 = arith.constant 1 : index
    %c0_26 = arith.constant 0 : index
    %c0_27 = arith.constant 0 : index
    %33 = vector.load %arg5[%c1_25, %c0_26, %c0_27] : memref<3x8x16xf32, #tpu.memory_space<vmem>>, vector<1x8x16xf32>
    %34 = vector.shape_cast %33 : vector<1x8x16xf32> to vector<8x16xf32>
    %cst_28 = arith.constant dense<0.000000e+00> : vector<64x16xf32>
    %35 = tpu.matmul %32, %34, %cst_28 {dimension_numbers = #tpu.dot_dimension_numbers<[1], [0], [0], [1], [0, 0, 1, 1], [], []>} : vector<64x8xf32>, vector<8x16xf32>, vector<64x16xf32> -> vector<64x16xf32>
    %36 = arith.addf %31, %35 : vector<64x16xf32>
    %c2 = arith.constant 2 : index
    %c0_29 = arith.constant 0 : index
    %37 = vector.load %arg14[%c2, %c0_29] : memref<72x128xf32, #tpu.memory_space<vmem>>, vector<64x8xf32>
    %c2_30 = arith.constant 2 : index
    %c0_31 = arith.constant 0 : index
    %c0_32 = arith.constant 0 : index
    %38 = vector.load %arg5[%c2_30, %c0_31, %c0_32] : memref<3x8x16xf32, #tpu.memory_space<vmem>>, vector<1x8x16xf32>
    %39 = vector.shape_cast %38 : vector<1x8x16xf32> to vector<8x16xf32>
    %cst_33 = arith.constant dense<0.000000e+00> : vector<64x16xf32>
    %40 = tpu.matmul %37, %39, %cst_33 {dimension_numbers = #tpu.dot_dimension_numbers<[1], [0], [0], [1], [0, 0, 1, 1], [], []>} : vector<64x8xf32>, vector<8x16xf32>, vector<64x16xf32> -> vector<64x16xf32>
    %41 = arith.addf %36, %40 : vector<64x16xf32>
    %c0_34 = arith.constant 0 : index
    %c0_35 = arith.constant 0 : index
    %42 = vector.load %arg6[%c0_34, %c0_35] : memref<1x16xf32, #tpu.memory_space<vmem>>, vector<1x16xf32>
    %43 = vector.broadcast %42 : vector<1x16xf32> to vector<64x16xf32>
    %44 = arith.addf %41, %43 : vector<64x16xf32>
    %cst_36 = arith.constant 0.000000e+00 : f32
    %45 = vector.broadcast %cst_36 : f32 to vector<64x16xf32>
    %46 = arith.cmpf ogt, %44, %45 : vector<64x16xf32>
    %47 = math.exp %44 : vector<64x16xf32>
    %cst_37 = arith.constant 1.000000e+00 : f32
    %48 = vector.broadcast %cst_37 : f32 to vector<64x16xf32>
    %49 = arith.subf %47, %48 : vector<64x16xf32>
    %50 = arith.select %46, %44, %49 : vector<64x16xi1>, vector<64x16xf32>
    %c0_38 = arith.constant 0 : index
    %c0_39 = arith.constant 0 : index
    %51 = vector.load %arg7[%c0_38, %c0_39] : memref<6x11xf32, #tpu.memory_space<vmem>>, vector<6x11xf32>
    %52 = vector.extract_strided_slice %50 {offsets = [0, 0], sizes = [59, 16], strides = [1, 1]} : vector<64x16xf32> to vector<59x16xf32>
    %53 = vector.extract_strided_slice %50 {offsets = [1, 0], sizes = [59, 16], strides = [1, 1]} : vector<64x16xf32> to vector<59x16xf32>
    %54 = arith.maximumf %52, %53 : vector<59x16xf32>
    %55 = vector.extract_strided_slice %54 {offsets = [0, 0], sizes = [11, 16], strides = [1, 1]} : vector<59x16xf32> to vector<11x16xf32>
    %cst_40 = arith.constant dense<0.000000e+00> : vector<6x16xf32>
    %56 = tpu.matmul %51, %55, %cst_40 {dimension_numbers = #tpu.dot_dimension_numbers<[1], [0], [0], [1], [0, 0, 1, 1], [], []>} : vector<6x11xf32>, vector<11x16xf32>, vector<6x16xf32> -> vector<6x16xf32>
    %57 = vector.extract_strided_slice %54 {offsets = [16, 0], sizes = [11, 16], strides = [1, 1]} : vector<59x16xf32> to vector<11x16xf32>
    %cst_41 = arith.constant dense<0.000000e+00> : vector<6x16xf32>
    %58 = tpu.matmul %51, %57, %cst_41 {dimension_numbers = #tpu.dot_dimension_numbers<[1], [0], [0], [1], [0, 0, 1, 1], [], []>} : vector<6x11xf32>, vector<11x16xf32>, vector<6x16xf32> -> vector<6x16xf32>
    %59 = vector.extract_strided_slice %54 {offsets = [32, 0], sizes = [11, 16], strides = [1, 1]} : vector<59x16xf32> to vector<11x16xf32>
    %cst_42 = arith.constant dense<0.000000e+00> : vector<6x16xf32>
    %60 = tpu.matmul %51, %59, %cst_42 {dimension_numbers = #tpu.dot_dimension_numbers<[1], [0], [0], [1], [0, 0, 1, 1], [], []>} : vector<6x11xf32>, vector<11x16xf32>, vector<6x16xf32> -> vector<6x16xf32>
    %61 = vector.extract_strided_slice %54 {offsets = [48, 0], sizes = [11, 16], strides = [1, 1]} : vector<59x16xf32> to vector<11x16xf32>
    %cst_43 = arith.constant dense<0.000000e+00> : vector<6x16xf32>
    %62 = tpu.matmul %51, %61, %cst_43 {dimension_numbers = #tpu.dot_dimension_numbers<[1], [0], [0], [1], [0, 0, 1, 1], [], []>} : vector<6x11xf32>, vector<11x16xf32>, vector<6x16xf32> -> vector<6x16xf32>
    %c0_44 = arith.constant 0 : index
    %c0_45 = arith.constant 0 : index
    %63 = vector.load %arg14[%c0_44, %c0_45] : memref<72x128xf32, #tpu.memory_space<vmem>>, vector<6x16xf32>
    tpu.vector_store %arg14[%c0_44, %c0_45], %56 {strides = array<i32>} : memref<72x128xf32, #tpu.memory_space<vmem>>, vector<6x16xf32>,
    %c8 = arith.constant 8 : index
    %c0_46 = arith.constant 0 : index
    %64 = vector.load %arg14[%c8, %c0_46] : memref<72x128xf32, #tpu.memory_space<vmem>>, vector<6x16xf32>
    tpu.vector_store %arg14[%c8, %c0_46], %58 {strides = array<i32>} : memref<72x128xf32, #tpu.memory_space<vmem>>, vector<6x16xf32>,
    %c16_47 = arith.constant 16 : index
    %c0_48 = arith.constant 0 : index
    %65 = vector.load %arg14[%c16_47, %c0_48] : memref<72x128xf32, #tpu.memory_space<vmem>>, vector<6x16xf32>
    tpu.vector_store %arg14[%c16_47, %c0_48], %60 {strides = array<i32>} : memref<72x128xf32, #tpu.memory_space<vmem>>, vector<6x16xf32>,
    %c24 = arith.constant 24 : index
    %c0_49 = arith.constant 0 : index
    %66 = vector.load %arg14[%c24, %c0_49] : memref<72x128xf32, #tpu.memory_space<vmem>>, vector<6x16xf32>
    tpu.vector_store %arg14[%c24, %c0_49], %62 {strides = array<i32>} : memref<72x128xf32, #tpu.memory_space<vmem>>, vector<6x16xf32>,
    %c0_50 = arith.constant 0 : index
    %c0_51 = arith.constant 0 : index
    %67 = vector.load %arg14[%c0_50, %c0_51] : memref<72x128xf32, #tpu.memory_space<vmem>>, vector<32x16xf32>
    %c0_52 = arith.constant 0 : index
    %c0_53 = arith.constant 0 : index
    %c0_54 = arith.constant 0 : index
    %68 = vector.load %arg8[%c0_52, %c0_53, %c0_54] : memref<3x16x32xf32, #tpu.memory_space<vmem>>, vector<1x16x32xf32>
    %69 = vector.shape_cast %68 : vector<1x16x32xf32> to vector<16x32xf32>
    %cst_55 = arith.constant dense<0.000000e+00> : vector<32x32xf32>
    %70 = tpu.matmul %67, %69, %cst_55 {dimension_numbers = #tpu.dot_dimension_numbers<[1], [0], [0], [1], [0, 0, 1, 1], [], []>} : vector<32x16xf32>, vector<16x32xf32>, vector<32x32xf32> -> vector<32x32xf32>
    %c1_56 = arith.constant 1 : index
    %c0_57 = arith.constant 0 : index
    %71 = vector.load %arg14[%c1_56, %c0_57] : memref<72x128xf32, #tpu.memory_space<vmem>>, vector<32x16xf32>
    %c1_58 = arith.constant 1 : index
    %c0_59 = arith.constant 0 : index
    %c0_60 = arith.constant 0 : index
    %72 = vector.load %arg8[%c1_58, %c0_59, %c0_60] : memref<3x16x32xf32, #tpu.memory_space<vmem>>, vector<1x16x32xf32>
    %73 = vector.shape_cast %72 : vector<1x16x32xf32> to vector<16x32xf32>
    %cst_61 = arith.constant dense<0.000000e+00> : vector<32x32xf32>
    %74 = tpu.matmul %71, %73, %cst_61 {dimension_numbers = #tpu.dot_dimension_numbers<[1], [0], [0], [1], [0, 0, 1, 1], [], []>} : vector<32x16xf32>, vector<16x32xf32>, vector<32x32xf32> -> vector<32x32xf32>
    %75 = arith.addf %70, %74 : vector<32x32xf32>
    %c2_62 = arith.constant 2 : index
    %c0_63 = arith.constant 0 : index
    %76 = vector.load %arg14[%c2_62, %c0_63] : memref<72x128xf32, #tpu.memory_space<vmem>>, vector<32x16xf32>
    %c2_64 = arith.constant 2 : index
    %c0_65 = arith.constant 0 : index
    %c0_66 = arith.constant 0 : index
    %77 = vector.load %arg8[%c2_64, %c0_65, %c0_66] : memref<3x16x32xf32, #tpu.memory_space<vmem>>, vector<1x16x32xf32>
    %78 = vector.shape_cast %77 : vector<1x16x32xf32> to vector<16x32xf32>
    %cst_67 = arith.constant dense<0.000000e+00> : vector<32x32xf32>
    %79 = tpu.matmul %76, %78, %cst_67 {dimension_numbers = #tpu.dot_dimension_numbers<[1], [0], [0], [1], [0, 0, 1, 1], [], []>} : vector<32x16xf32>, vector<16x32xf32>, vector<32x32xf32> -> vector<32x32xf32>
    %80 = arith.addf %75, %79 : vector<32x32xf32>
    %c0_68 = arith.constant 0 : index
    %c0_69 = arith.constant 0 : index
    %81 = vector.load %arg9[%c0_68, %c0_69] : memref<1x32xf32, #tpu.memory_space<vmem>>, vector<1x32xf32>
    %82 = vector.broadcast %81 : vector<1x32xf32> to vector<32x32xf32>
    %83 = arith.addf %80, %82 : vector<32x32xf32>
    %cst_70 = arith.constant 0.000000e+00 : f32
    %84 = vector.broadcast %cst_70 : f32 to vector<32x32xf32>
    %85 = arith.cmpf ogt, %83, %84 : vector<32x32xf32>
    %86 = math.exp %83 : vector<32x32xf32>
    %cst_71 = arith.constant 1.000000e+00 : f32
    %87 = vector.broadcast %cst_71 : f32 to vector<32x32xf32>
    %88 = arith.subf %86, %87 : vector<32x32xf32>
    %89 = arith.select %85, %83, %88 : vector<32x32xi1>, vector<32x32xf32>
    %c0_72 = arith.constant 0 : index
    %c0_73 = arith.constant 0 : index
    %90 = vector.load %arg10[%c0_72, %c0_73] : memref<2x3xf32, #tpu.memory_space<vmem>>, vector<2x3xf32>
    %91 = vector.extract_strided_slice %89 {offsets = [0, 0], sizes = [27, 32], strides = [1, 1]} : vector<32x32xf32> to vector<27x32xf32>
    %92 = vector.extract_strided_slice %89 {offsets = [1, 0], sizes = [27, 32], strides = [1, 1]} : vector<32x32xf32> to vector<27x32xf32>
    %93 = arith.maximumf %91, %92 : vector<27x32xf32>
    %94 = vector.extract_strided_slice %93 {offsets = [0, 0], sizes = [3, 32], strides = [1, 1]} : vector<27x32xf32> to vector<3x32xf32>
    %cst_74 = arith.constant dense<0.000000e+00> : vector<2x32xf32>
    %95 = tpu.matmul %90, %94, %cst_74 {dimension_numbers = #tpu.dot_dimension_numbers<[1], [0], [0], [1], [0, 0, 1, 1], [], []>} : vector<2x3xf32>, vector<3x32xf32>, vector<2x32xf32> -> vector<2x32xf32>
    %96 = vector.extract_strided_slice %93 {offsets = [8, 0], sizes = [3, 32], strides = [1, 1]} : vector<27x32xf32> to vector<3x32xf32>
    %cst_75 = arith.constant dense<0.000000e+00> : vector<2x32xf32>
    %97 = tpu.matmul %90, %96, %cst_75 {dimension_numbers = #tpu.dot_dimension_numbers<[1], [0], [0], [1], [0, 0, 1, 1], [], []>} : vector<2x3xf32>, vector<3x32xf32>, vector<2x32xf32> -> vector<2x32xf32>
    %98 = vector.extract_strided_slice %93 {offsets = [16, 0], sizes = [3, 32], strides = [1, 1]} : vector<27x32xf32> to vector<3x32xf32>
    %cst_76 = arith.constant dense<0.000000e+00> : vector<2x32xf32>
    %99 = tpu.matmul %90, %98, %cst_76 {dimension_numbers = #tpu.dot_dimension_numbers<[1], [0], [0], [1], [0, 0, 1, 1], [], []>} : vector<2x3xf32>, vector<3x32xf32>, vector<2x32xf32> -> vector<2x32xf32>
    %100 = vector.extract_strided_slice %93 {offsets = [24, 0], sizes = [3, 32], strides = [1, 1]} : vector<27x32xf32> to vector<3x32xf32>
    %cst_77 = arith.constant dense<0.000000e+00> : vector<2x32xf32>
    %101 = tpu.matmul %90, %100, %cst_77 {dimension_numbers = #tpu.dot_dimension_numbers<[1], [0], [0], [1], [0, 0, 1, 1], [], []>} : vector<2x3xf32>, vector<3x32xf32>, vector<2x32xf32> -> vector<2x32xf32>
    %102 = vector.extract_strided_slice %95 {offsets = [0, 0], sizes = [1, 32], strides = [1, 1]} : vector<2x32xf32> to vector<1x32xf32>
    %c0_78 = arith.constant 0 : index
    %c0_79 = arith.constant 0 : index
    %c0_80 = arith.constant 0 : index
    %103 = vector.load %arg11[%c0_78, %c0_79, %c0_80] : memref<2x32x4xf32, #tpu.memory_space<vmem>>, vector<1x32x4xf32>
    %104 = vector.shape_cast %103 : vector<1x32x4xf32> to vector<32x4xf32>
    %cst_81 = arith.constant dense<0.000000e+00> : vector<1x4xf32>
    %105 = tpu.matmul %102, %104, %cst_81 {dimension_numbers = #tpu.dot_dimension_numbers<[1], [0], [0], [1], [0, 0, 1, 1], [], []>} : vector<1x32xf32>, vector<32x4xf32>, vector<1x4xf32> -> vector<1x4xf32>
    %106 = vector.extract_strided_slice %95 {offsets = [1, 0], sizes = [1, 32], strides = [1, 1]} : vector<2x32xf32> to vector<1x32xf32>
    %c1_82 = arith.constant 1 : index
    %c0_83 = arith.constant 0 : index
    %c0_84 = arith.constant 0 : index
    %107 = vector.load %arg11[%c1_82, %c0_83, %c0_84] : memref<2x32x4xf32, #tpu.memory_space<vmem>>, vector<1x32x4xf32>
    %108 = vector.shape_cast %107 : vector<1x32x4xf32> to vector<32x4xf32>
    %cst_85 = arith.constant dense<0.000000e+00> : vector<1x4xf32>
    %109 = tpu.matmul %106, %108, %cst_85 {dimension_numbers = #tpu.dot_dimension_numbers<[1], [0], [0], [1], [0, 0, 1, 1], [], []>} : vector<1x32xf32>, vector<32x4xf32>, vector<1x4xf32> -> vector<1x4xf32>
    %110 = arith.addf %105, %109 : vector<1x4xf32>
    %c0_86 = arith.constant 0 : index
    %c0_87 = arith.constant 0 : index
    %111 = vector.load %arg12[%c0_86, %c0_87] : memref<1x4xf32, #tpu.memory_space<vmem>>, vector<1x4xf32>
    %112 = arith.addf %110, %111 : vector<1x4xf32>
    %cst_88 = arith.constant dense<0xFF800000> : vector<1xf32>
    %113 = vector.multi_reduction <maximumf>, %112, %cst_88 [1] : vector<1x4xf32> to vector<1xf32>
    %114 = vector.shape_cast %113 : vector<1xf32> to vector<1x1xf32>
    %115 = vector.broadcast %114 : vector<1x1xf32> to vector<1x4xf32>
    %116 = arith.subf %112, %115 : vector<1x4xf32>
    %117 = math.exp %116 : vector<1x4xf32>
    %cst_89 = arith.constant dense<0.000000e+00> : vector<1xf32>
    %118 = vector.multi_reduction <add>, %117, %cst_89 [1] : vector<1x4xf32> to vector<1xf32>
    %119 = vector.shape_cast %118 : vector<1xf32> to vector<1x1xf32>
    %120 = math.log %119 : vector<1x1xf32>
    %121 = vector.broadcast %120 : vector<1x1xf32> to vector<1x4xf32>
    %122 = arith.subf %116, %121 : vector<1x4xf32>
    %c0_90 = arith.constant 0 : index
    %c0_91 = arith.constant 0 : index
    %c0_92 = arith.constant 0 : index
    %123 = vector.load %arg13[%c0_90, %c0_91, %c0_92] : memref<4x1x4xf32, #tpu.memory_space<vmem>>, vector<1x1x4xf32>
    %124 = vector.shape_cast %123 : vector<1x1x4xf32> to vector<1x4xf32>
    %125 = vector.shape_cast %122 : vector<1x4xf32> to vector<1x1x4xf32>
    tpu.vector_store %arg13[%c0_90, %c0_91, %c0_92], %125 {strides = array<i32>} : memref<4x1x4xf32, #tpu.memory_space<vmem>>, vector<1x1x4xf32>,
    %126 = vector.extract_strided_slice %97 {offsets = [0, 0], sizes = [1, 32], strides = [1, 1]} : vector<2x32xf32> to vector<1x32xf32>
    %c0_93 = arith.constant 0 : index
    %c0_94 = arith.constant 0 : index
    %c0_95 = arith.constant 0 : index
    %127 = vector.load %arg11[%c0_93, %c0_94, %c0_95] : memref<2x32x4xf32, #tpu.memory_space<vmem>>, vector<1x32x4xf32>
    %128 = vector.shape_cast %127 : vector<1x32x4xf32> to vector<32x4xf32>
    %cst_96 = arith.constant dense<0.000000e+00> : vector<1x4xf32>
    %129 = tpu.matmul %126, %128, %cst_96 {dimension_numbers = #tpu.dot_dimension_numbers<[1], [0], [0], [1], [0, 0, 1, 1], [], []>} : vector<1x32xf32>, vector<32x4xf32>, vector<1x4xf32> -> vector<1x4xf32>
    %130 = vector.extract_strided_slice %97 {offsets = [1, 0], sizes = [1, 32], strides = [1, 1]} : vector<2x32xf32> to vector<1x32xf32>
    %c1_97 = arith.constant 1 : index
    %c0_98 = arith.constant 0 : index
    %c0_99 = arith.constant 0 : index
    %131 = vector.load %arg11[%c1_97, %c0_98, %c0_99] : memref<2x32x4xf32, #tpu.memory_space<vmem>>, vector<1x32x4xf32>
    %132 = vector.shape_cast %131 : vector<1x32x4xf32> to vector<32x4xf32>
    %cst_100 = arith.constant dense<0.000000e+00> : vector<1x4xf32>
    %133 = tpu.matmul %130, %132, %cst_100 {dimension_numbers = #tpu.dot_dimension_numbers<[1], [0], [0], [1], [0, 0, 1, 1], [], []>} : vector<1x32xf32>, vector<32x4xf32>, vector<1x4xf32> -> vector<1x4xf32>
    %134 = arith.addf %129, %133 : vector<1x4xf32>
    %c0_101 = arith.constant 0 : index
    %c0_102 = arith.constant 0 : index
    %135 = vector.load %arg12[%c0_101, %c0_102] : memref<1x4xf32, #tpu.memory_space<vmem>>, vector<1x4xf32>
    %136 = arith.addf %134, %135 : vector<1x4xf32>
    %cst_103 = arith.constant dense<0xFF800000> : vector<1xf32>
    %137 = vector.multi_reduction <maximumf>, %136, %cst_103 [1] : vector<1x4xf32> to vector<1xf32>
    %138 = vector.shape_cast %137 : vector<1xf32> to vector<1x1xf32>
    %139 = vector.broadcast %138 : vector<1x1xf32> to vector<1x4xf32>
    %140 = arith.subf %136, %139 : vector<1x4xf32>
    %141 = math.exp %140 : vector<1x4xf32>
    %cst_104 = arith.constant dense<0.000000e+00> : vector<1xf32>
    %142 = vector.multi_reduction <add>, %141, %cst_104 [1] : vector<1x4xf32> to vector<1xf32>
    %143 = vector.shape_cast %142 : vector<1xf32> to vector<1x1xf32>
    %144 = math.log %143 : vector<1x1xf32>
    %145 = vector.broadcast %144 : vector<1x1xf32> to vector<1x4xf32>
    %146 = arith.subf %140, %145 : vector<1x4xf32>
    %c1_105 = arith.constant 1 : index
    %c0_106 = arith.constant 0 : index
    %c0_107 = arith.constant 0 : index
    %147 = vector.load %arg13[%c1_105, %c0_106, %c0_107] : memref<4x1x4xf32, #tpu.memory_space<vmem>>, vector<1x1x4xf32>
    %148 = vector.shape_cast %147 : vector<1x1x4xf32> to vector<1x4xf32>
    %149 = vector.shape_cast %146 : vector<1x4xf32> to vector<1x1x4xf32>
    tpu.vector_store %arg13[%c1_105, %c0_106, %c0_107], %149 {strides = array<i32>} : memref<4x1x4xf32, #tpu.memory_space<vmem>>, vector<1x1x4xf32>,
    %150 = vector.extract_strided_slice %99 {offsets = [0, 0], sizes = [1, 32], strides = [1, 1]} : vector<2x32xf32> to vector<1x32xf32>
    %c0_108 = arith.constant 0 : index
    %c0_109 = arith.constant 0 : index
    %c0_110 = arith.constant 0 : index
    %151 = vector.load %arg11[%c0_108, %c0_109, %c0_110] : memref<2x32x4xf32, #tpu.memory_space<vmem>>, vector<1x32x4xf32>
    %152 = vector.shape_cast %151 : vector<1x32x4xf32> to vector<32x4xf32>
    %cst_111 = arith.constant dense<0.000000e+00> : vector<1x4xf32>
    %153 = tpu.matmul %150, %152, %cst_111 {dimension_numbers = #tpu.dot_dimension_numbers<[1], [0], [0], [1], [0, 0, 1, 1], [], []>} : vector<1x32xf32>, vector<32x4xf32>, vector<1x4xf32> -> vector<1x4xf32>
    %154 = vector.extract_strided_slice %99 {offsets = [1, 0], sizes = [1, 32], strides = [1, 1]} : vector<2x32xf32> to vector<1x32xf32>
    %c1_112 = arith.constant 1 : index
    %c0_113 = arith.constant 0 : index
    %c0_114 = arith.constant 0 : index
    %155 = vector.load %arg11[%c1_112, %c0_113, %c0_114] : memref<2x32x4xf32, #tpu.memory_space<vmem>>, vector<1x32x4xf32>
    %156 = vector.shape_cast %155 : vector<1x32x4xf32> to vector<32x4xf32>
    %cst_115 = arith.constant dense<0.000000e+00> : vector<1x4xf32>
    %157 = tpu.matmul %154, %156, %cst_115 {dimension_numbers = #tpu.dot_dimension_numbers<[1], [0], [0], [1], [0, 0, 1, 1], [], []>} : vector<1x32xf32>, vector<32x4xf32>, vector<1x4xf32> -> vector<1x4xf32>
    %158 = arith.addf %153, %157 : vector<1x4xf32>
    %c0_116 = arith.constant 0 : index
    %c0_117 = arith.constant 0 : index
    %159 = vector.load %arg12[%c0_116, %c0_117] : memref<1x4xf32, #tpu.memory_space<vmem>>, vector<1x4xf32>
    %160 = arith.addf %158, %159 : vector<1x4xf32>
    %cst_118 = arith.constant dense<0xFF800000> : vector<1xf32>
    %161 = vector.multi_reduction <maximumf>, %160, %cst_118 [1] : vector<1x4xf32> to vector<1xf32>
    %162 = vector.shape_cast %161 : vector<1xf32> to vector<1x1xf32>
    %163 = vector.broadcast %162 : vector<1x1xf32> to vector<1x4xf32>
    %164 = arith.subf %160, %163 : vector<1x4xf32>
    %165 = math.exp %164 : vector<1x4xf32>
    %cst_119 = arith.constant dense<0.000000e+00> : vector<1xf32>
    %166 = vector.multi_reduction <add>, %165, %cst_119 [1] : vector<1x4xf32> to vector<1xf32>
    %167 = vector.shape_cast %166 : vector<1xf32> to vector<1x1xf32>
    %168 = math.log %167 : vector<1x1xf32>
    %169 = vector.broadcast %168 : vector<1x1xf32> to vector<1x4xf32>
    %170 = arith.subf %164, %169 : vector<1x4xf32>
    %c2_120 = arith.constant 2 : index
    %c0_121 = arith.constant 0 : index
    %c0_122 = arith.constant 0 : index
    %171 = vector.load %arg13[%c2_120, %c0_121, %c0_122] : memref<4x1x4xf32, #tpu.memory_space<vmem>>, vector<1x1x4xf32>
    %172 = vector.shape_cast %171 : vector<1x1x4xf32> to vector<1x4xf32>
    %173 = vector.shape_cast %170 : vector<1x4xf32> to vector<1x1x4xf32>
    tpu.vector_store %arg13[%c2_120, %c0_121, %c0_122], %173 {strides = array<i32>} : memref<4x1x4xf32, #tpu.memory_space<vmem>>, vector<1x1x4xf32>,
    %174 = vector.extract_strided_slice %101 {offsets = [0, 0], sizes = [1, 32], strides = [1, 1]} : vector<2x32xf32> to vector<1x32xf32>
    %c0_123 = arith.constant 0 : index
    %c0_124 = arith.constant 0 : index
    %c0_125 = arith.constant 0 : index
    %175 = vector.load %arg11[%c0_123, %c0_124, %c0_125] : memref<2x32x4xf32, #tpu.memory_space<vmem>>, vector<1x32x4xf32>
    %176 = vector.shape_cast %175 : vector<1x32x4xf32> to vector<32x4xf32>
    %cst_126 = arith.constant dense<0.000000e+00> : vector<1x4xf32>
    %177 = tpu.matmul %174, %176, %cst_126 {dimension_numbers = #tpu.dot_dimension_numbers<[1], [0], [0], [1], [0, 0, 1, 1], [], []>} : vector<1x32xf32>, vector<32x4xf32>, vector<1x4xf32> -> vector<1x4xf32>
    %178 = vector.extract_strided_slice %101 {offsets = [1, 0], sizes = [1, 32], strides = [1, 1]} : vector<2x32xf32> to vector<1x32xf32>
    %c1_127 = arith.constant 1 : index
    %c0_128 = arith.constant 0 : index
    %c0_129 = arith.constant 0 : index
    %179 = vector.load %arg11[%c1_127, %c0_128, %c0_129] : memref<2x32x4xf32, #tpu.memory_space<vmem>>, vector<1x32x4xf32>
    %180 = vector.shape_cast %179 : vector<1x32x4xf32> to vector<32x4xf32>
    %cst_130 = arith.constant dense<0.000000e+00> : vector<1x4xf32>
    %181 = tpu.matmul %178, %180, %cst_130 {dimension_numbers = #tpu.dot_dimension_numbers<[1], [0], [0], [1], [0, 0, 1, 1], [], []>} : vector<1x32xf32>, vector<32x4xf32>, vector<1x4xf32> -> vector<1x4xf32>
    %182 = arith.addf %177, %181 : vector<1x4xf32>
    %c0_131 = arith.constant 0 : index
    %c0_132 = arith.constant 0 : index
    %183 = vector.load %arg12[%c0_131, %c0_132] : memref<1x4xf32, #tpu.memory_space<vmem>>, vector<1x4xf32>
    %184 = arith.addf %182, %183 : vector<1x4xf32>
    %cst_133 = arith.constant dense<0xFF800000> : vector<1xf32>
    %185 = vector.multi_reduction <maximumf>, %184, %cst_133 [1] : vector<1x4xf32> to vector<1xf32>
    %186 = vector.shape_cast %185 : vector<1xf32> to vector<1x1xf32>
    %187 = vector.broadcast %186 : vector<1x1xf32> to vector<1x4xf32>
    %188 = arith.subf %184, %187 : vector<1x4xf32>
    %189 = math.exp %188 : vector<1x4xf32>
    %cst_134 = arith.constant dense<0.000000e+00> : vector<1xf32>
    %190 = vector.multi_reduction <add>, %189, %cst_134 [1] : vector<1x4xf32> to vector<1xf32>
    %191 = vector.shape_cast %190 : vector<1xf32> to vector<1x1xf32>
    %192 = math.log %191 : vector<1x1xf32>
    %193 = vector.broadcast %192 : vector<1x1xf32> to vector<1x4xf32>
    %194 = arith.subf %188, %193 : vector<1x4xf32>
    %c3 = arith.constant 3 : index
    %c0_135 = arith.constant 0 : index
    %c0_136 = arith.constant 0 : index
    %195 = vector.load %arg13[%c3, %c0_135, %c0_136] : memref<4x1x4xf32, #tpu.memory_space<vmem>>, vector<1x1x4xf32>
    %196 = vector.shape_cast %195 : vector<1x1x4xf32> to vector<1x4xf32>
    %197 = vector.shape_cast %194 : vector<1x4xf32> to vector<1x1x4xf32>
    tpu.vector_store %arg13[%c3, %c0_135, %c0_136], %197 {strides = array<i32>} : memref<4x1x4xf32, #tpu.memory_space<vmem>>, vector<1x1x4xf32>,
    return
  }
  func.func @transform_0(%arg0: i32) -> (i32, i32) {
    %c0_i32 = arith.constant 0 : i32
    %c0_i32_0 = arith.constant 0 : i32
    return %arg0, %c0_i32 : i32, i32
  }
  func.func @transform_1(%arg0: i32) -> (i32, i32) {
    %c0_i32 = arith.constant 0 : i32
    %c0_i32_0 = arith.constant 0 : i32
    %c0_i32_1 = arith.constant 0 : i32
    return %c0_i32, %c0_i32_0 : i32, i32
  }
  func.func @transform_2(%arg0: i32) -> (i32, i32) {
    %c0_i32 = arith.constant 0 : i32
    %c0_i32_0 = arith.constant 0 : i32
    %c0_i32_1 = arith.constant 0 : i32
    return %c0_i32, %c0_i32_0 : i32, i32
  }
  func.func @transform_3(%arg0: i32) -> (i32, i32) {
    %c0_i32 = arith.constant 0 : i32
    %c0_i32_0 = arith.constant 0 : i32
    %c0_i32_1 = arith.constant 0 : i32
    return %c0_i32, %c0_i32_0 : i32, i32
  }
  func.func @transform_4(%arg0: i32) -> (i32, i32, i32) {
    %c0_i32 = arith.constant 0 : i32
    %c0_i32_0 = arith.constant 0 : i32
    %c0_i32_1 = arith.constant 0 : i32
    %c0_i32_2 = arith.constant 0 : i32
    return %c0_i32, %c0_i32_0, %c0_i32_1 : i32, i32, i32
  }
  func.func @transform_5(%arg0: i32) -> (i32, i32) {
    %c0_i32 = arith.constant 0 : i32
    %c0_i32_0 = arith.constant 0 : i32
    %c0_i32_1 = arith.constant 0 : i32
    return %c0_i32, %c0_i32_0 : i32, i32
  }
  func.func @transform_6(%arg0: i32) -> (i32, i32) {
    %c0_i32 = arith.constant 0 : i32
    %c0_i32_0 = arith.constant 0 : i32
    %c0_i32_1 = arith.constant 0 : i32
    return %c0_i32, %c0_i32_0 : i32, i32
  }
  func.func @transform_7(%arg0: i32) -> (i32, i32, i32) {
    %c0_i32 = arith.constant 0 : i32
    %c0_i32_0 = arith.constant 0 : i32
    %c0_i32_1 = arith.constant 0 : i32
    %c0_i32_2 = arith.constant 0 : i32
    return %c0_i32, %c0_i32_0, %c0_i32_1 : i32, i32, i32
  }
  func.func @transform_8(%arg0: i32) -> (i32, i32) {
    %c0_i32 = arith.constant 0 : i32
    %c0_i32_0 = arith.constant 0 : i32
    %c0_i32_1 = arith.constant 0 : i32
    return %c0_i32, %c0_i32_0 : i32, i32
  }
  func.func @transform_9(%arg0: i32) -> (i32, i32) {
    %c0_i32 = arith.constant 0 : i32
    %c0_i32_0 = arith.constant 0 : i32
    %c0_i32_1 = arith.constant 0 : i32
    return %c0_i32, %c0_i32_0 : i32, i32
  }
  func.func @transform_10(%arg0: i32) -> (i32, i32, i32) {
    %c0_i32 = arith.constant 0 : i32
    %c0_i32_0 = arith.constant 0 : i32
    %c0_i32_1 = arith.constant 0 : i32
    %c0_i32_2 = arith.constant 0 : i32
    return %c0_i32, %c0_i32_0, %c0_i32_1 : i32, i32, i32
  }
  func.func @transform_11(%arg0: i32) -> (i32, i32) {
    %c0_i32 = arith.constant 0 : i32
    %c0_i32_0 = arith.constant 0 : i32
    %c0_i32_1 = arith.constant 0 : i32
    return %c0_i32, %c0_i32_0 : i32, i32
  }
  func.func @transform_12(%arg0: i32) -> (i32, i32, i32) {
    %c0_i32 = arith.constant 0 : i32
    %c0_i32_0 = arith.constant 0 : i32
    %c0_i32_1 = arith.constant 0 : i32
    return %arg0, %c0_i32, %c0_i32_0 : i32, i32, i32
  }
}

</mosaic_0001>

<bundles_post_ra>
// kernel: tpu_custom_call.1
= control target key start
LH: loop header
LB: loop body
LE: loop exit
PB: predicated region body
PF: predicated region fallthrough
CT: control target
= control target key end

     0   :  { %s2197_s21 = smov 0   ;;  %s2529_s0 = inlined_call_operand.vmem [shape: f32[256,12], index: 0, kind: input, shape index: {}]   ;;  %s2530_s1 = inlined_call_operand.vmem [shape: f32[12,8], index: 1, kind: input, shape index: {}]   ;;  %s2531_s2 = inlined_call_operand.vmem [shape: f32[1,8], index: 2, kind: input, shape index: {}]   ;;  %s2532_s3 = inlined_call_operand.vmem [shape: f32[15,29], index: 3, kind: input, shape index: {}]   ;;  %s2533_s4 = inlined_call_operand.vmem [shape: f32[3,8,16], index: 4, kind: input, shape index: {}]   ;;  %s2534_s5 = inlined_call_operand.vmem [shape: f32[1,16], index: 5, kind: input, shape index: {}]   ;;  %s2535_s6 = inlined_call_operand.vmem [shape: f32[6,11], index: 6, kind: input, shape index: {}]   ;;  %s2536_s7 = inlined_call_operand.vmem [shape: f32[3,16,32], index: 7, kind: input, shape index: {}]   ;;  %s2537_s8 = inlined_call_operand.vmem [shape: f32[1,32], index: 8, kind: input, shape index: {}]   ;;  %s2538_s9 = inlined_call_operand.vmem [shape: f32[2,3], index: 9, kind: input, shape index: {}]   ;;  %s2539_s10 = inlined_call_operand.vmem [shape: f32[2,32,4], index: 10, kind: input, shape index: {}]   ;;  %s2540_s11 = inlined_call_operand.vmem [shape: f32[1,4], index: 11, kind: input, shape index: {}]   ;;  %s2541_s12 = inlined_call_operand.vmem [shape: f32[8,1,4], index: 12, kind: output, shape index: {}]  }
   0x1 LB: > { %s1889_s22 = sadd.s32 4294967295, %s2130_s21   ;;  %p1893_p0 = scmp.ge.s32.totalorder %s2130_s21, 1  ;;  %s2130_s21 = sphi %s2197_s21, %s22_s21  }
   0x2   : > { %p363_p1 = scmp.lt.s32.totalorder %s2130_s21, 3 }
   0x4   : > { %p364_p2 = pnand %p1893_p0, %p363_p1 }
   0x5   : > { %s1894_s27 = sshll.u32 (!%p364_p2), %s1889_s22, 4  ;;  %s1896_s24 = sshll.u32 (!%p364_p2), %s1889_s22, 2 }
   0x6   : > { %367 = sbr.rel (%p364_p2) target bundleno = 1427 (0x593), region = 68  ;;  %p405_p3 = scmp.lt.s32.totalorder (!%p364_p2), %s1894_s27, 31 }
   0x7   : > { %p411_p4 = scmp.lt.s32.totalorder (!%p364_p2), %s1896_s24, 7 }
   0xb   : > { %v432_v0 = vld [vmem:[%s2530_s1 + $0x8] sm:$0xf]  ;;  %vm486_vm0 = vcmask 1043456   ;;  %v431_v1 = vld [vmem:[%s2530_s1] sm:$0xff]  ;;  %s2543_s27 = smov (!%p405_p3, %s1894_s27), 31  ;;  %vm437_vm1 = vcmask 97280  }
   0xc   : > { %1897 = vmatpush.msk.msra.mxu0 %vm486_vm0, %v432_v0  ;;  %s1895_s28 = sshll.u32 %s2543_s27, 3  ;;  %v2253_v21 = vld [vmem:[%s2531_s2] ss:$0 sm:$0xff]  ;;  %vm653_vm7 = vcmask 1046528   ;;  %vm724_vm8 = vcmask 1044480   ;;  %vm717_vm9 = vcmask 236544  }
   0xd   : > { %s2216_s13 = scalar_lea.vmem %s2529_s0, %s1895_s28  ;;  %s2545_s24 = smov (!%p411_p4, %s1896_s24), 7 }
   0xe   : > { %505 = vmatpush.msra.mxu0 %v431_v1  ;;  %v415_v2 = vld [vmem:[%s2216_s13] sm:$0xff]  ;;  %v416_v3 = vld [vmem:[%s2216_s13 + $0x8] sm:$0xff]  ;;  %v417_v4 = vld [vmem:[%s2216_s13 + $0x10] sm:$0xff]  ;;  %s413_s27 = scalar_lea.vmem %s2541_s12, %s2545_s24 }
   0xf   : > { %1898 = vmatmul.msk.f32.vlgmr.msra.gmra.mxu0 %vm437_vm1, %v415_v2  ;;  %v418_v5 = vld [vmem:[%s2216_s13 + $0x18] sm:$0xff]  ;;  %v419_v6 = vld [vmem:[%s2216_s13 + $0x20] sm:$0xff]  ;;  %v420_v7 = vld [vmem:[%s2216_s13 + $0x28] sm:$0xff] }
  0x10   : > { %v421_v8 = vld [vmem:[%s2216_s13 + $0x30] sm:$0xff]  ;;  %v422_v9 = vld [vmem:[%s2216_s13 + $0x38] sm:$0xff]  ;;  %v423_v10 = vld [vmem:[%s2216_s13 + $0x40] sm:$0xff] }
  0x11   : > { %v424_v11 = vld [vmem:[%s2216_s13 + $0x48] sm:$0xff]  ;;  %v425_v12 = vld [vmem:[%s2216_s13 + $0x50] sm:$0xff]  ;;  %v426_v13 = vld [vmem:[%s2216_s13 + $0x58] sm:$0xff] }
  0x12   : > { %v427_v14 = vld [vmem:[%s2216_s13 + $0x60] sm:$0xff]  ;;  %v428_v15 = vld [vmem:[%s2216_s13 + $0x68] sm:$0xff]  ;;  %v429_v16 = vld [vmem:[%s2216_s13 + $0x70] sm:$0xff] }
  0x13   : > { %v430_v17 = vld [vmem:[%s2216_s13 + $0x78] sm:$0xff]  ;;  %v2274_v2 = vld [vmem:[%s2532_s3] sm:$0xff] }
  0x17   : > { %1899 = vmatmul.msk.f32.gmra.mxu0 %vm437_vm1, %v416_v3 }
  0x1f   : > { %1900 = vmatmul.msk.f32.gmra.mxu0 %vm437_vm1, %v417_v4 }
  0x27   : > { %1901 = vmatmul.msk.f32.gmra.mxu0 %vm437_vm1, %v418_v5 }
  0x2f   : > { %1902 = vmatmul.msk.f32.gmra.mxu0 %vm437_vm1, %v419_v6 }
  0x37   : > { %1903 = vmatmul.msk.f32.gmra.mxu0 %vm437_vm1, %v420_v7 }
  0x3f   : > { %1904 = vmatmul.msk.f32.gmra.mxu0 %vm437_vm1, %v421_v8 }
  0x47   : > { %1905 = vmatmul.msk.f32.gmra.mxu0 %vm437_vm1, %v422_v9  ;;  %v2283_v9 = vld [vmem:[%s2532_s3 + $0x8] sm:$0x7f] }
  0x4f   : > { %1906 = vmatmul.msk.f32.gmra.mxu0 %vm437_vm1, %v423_v10 }
  0x57   : > { %1907 = vmatmul.msk.f32.gmra.mxu0 %vm437_vm1, %v424_v11 }
  0x5f   : > { %1908 = vmatmul.msk.f32.gmra.mxu0 %vm437_vm1, %v425_v12 }
  0x67   : > { %1909 = vmatmul.msk.f32.gmra.mxu0 %vm437_vm1, %v426_v13 }
  0x6f   : > { %1910 = vmatmul.msk.f32.gmra.mxu0 %vm437_vm1, %v427_v14 }
  0x77   : > { %1911 = vmatmul.msk.f32.gmra.mxu0 %vm437_vm1, %v428_v15 }
  0x7f   : > { %1912 = vmatmul.msk.f32.gmra.mxu0 %vm437_vm1, %v429_v16 }
  0x87   : > { %1913 = vmatmul.msk.f32.gmra.mxu0 %vm437_vm1, %v430_v17 }
  0x8c   : > { %v507_v18 = vpop.f32.mrf.mxu0 }
  0x8d   : > { %v508_v26 = vadd.f32 %v2253_v21, %v507_v18 }
  0x8f   : > { %v571_v30 = vmul.f32 1.442695, %v508_v26  ;;  %vm555_vm6 = vcmp.gt.f32.partialorder %v508_v26, 0.0 }
  0x94   : > { %v510_v19 = vpop.f32.mrf.mxu0 }
  0x95   : > { %v511_v24 = vadd.f32 %v2253_v21, %v510_v19 }
  0x97   : > { %v573_v29 = vmul.f32 1.442695, %v511_v24  ;;  %vm556_vm5 = vcmp.gt.f32.partialorder %v511_v24, 0.0 }
  0x9c   : > { %v513_v20 = vpop.f32.mrf.mxu0 }
  0x9d   : > { %v514_v22 = vadd.f32 %v2253_v21, %v513_v20 }
  0x9f   : > { %v575_v27 = vmul.f32 1.442695, %v514_v22  ;;  %vm557_vm3 = vcmp.gt.f32.partialorder %v514_v22, 0.0 }
  0xa4   : > { %v516_v23 = vpop.f32.mrf.mxu0 }
  0xa5   : > { %v517_v25 = vadd.f32 %v2253_v21, %v516_v23 }
  0xa7   : > { %v577_v28 = vmul.f32 1.442695, %v517_v25  ;;  %vm558_vm2 = vcmp.gt.f32.partialorder %v517_v25, 0.0 }
  0xa9   : > { %2052 = vpow2.f32 %v577_v28 }
  0xaa   : > { %2054 = vpow2.f32 %v575_v27 }
  0xab   : > { %2056 = vpow2.f32 %v573_v29 }
  0xac   : > { %v519_v31 = vpop.f32.mrf.mxu0  ;;  %2058 = vpow2.f32 %v571_v30 }
  0xad   : > { %v520_v32 = vadd.f32 %v2253_v21, %v519_v31 }
  0xaf   : > { %v2053_v33 = vpop.eup %2052  ;;  %v579_v34 = vmul.f32 1.442695, %v520_v32  ;;  %vm559_vm4 = vcmp.gt.f32.partialorder %v520_v32, 0.0 }
  0xb0   : > { %v2055_v35 = vpop.eup %2054  ;;  %v1917_v36 = vadd.f32 -1.0, %v2053_v33 }
  0xb1   : > { %2060 = vpow2.f32 %v579_v34  ;;  %v2057_v37 = vpop.eup %2056  ;;  %v1916_v39 = vadd.f32 -1.0, %v2055_v35 }
  0xb2   : > { %v2059_v40 = vpop.eup %2058  ;;  %v622_v41 = vsel %vm558_vm2, %v517_v25, %v1917_v36  ;;  %v1915_v42 = vadd.f32 -1.0, %v2057_v37 }
  0xb3   : > { %v621_v45 = vsel %vm557_vm3, %v514_v22, %v1916_v39  ;;  %v1914_v46 = vadd.f32 -1.0, %v2059_v40  ;;  %v659_v47 = vrot.slane %v622_v41, 1 }
  0xb4   : > { %v522_v38 = vpop.f32.mrf.mxu0  ;;  %v620_v49 = vsel %vm556_vm5, %v511_v24, %v1915_v42  ;;  %v657_v51 = vrot.slane %v621_v45, 1  ;;  %vm829_vm5 = vcmask 64512  }
  0xb5   : > { %v619_v53 = vsel %vm555_vm6, %v508_v26, %v1914_v46  ;;  %v655_v56 = vrot.slane %v620_v49, 1  ;;  %v523_v3 = vadd.f32 %v2253_v21, %v522_v38  ;;  %vm831_vm6 = vcmask 63488  }
  0xb6   : > { %v660_v55 = vsel %vm653_vm7, %v657_v51, %v659_v47  ;;  %v654_v59 = vrot.slane %v619_v53, 1 }
  0xb7   : > { %v2061_v43 = vpop.eup %2060  ;;  %v658_v58 = vsel %vm653_vm7, %v655_v56, %v657_v51  ;;  %v703_v60 = vmax.f32 %v621_v45, %v660_v55  ;;  %v581_v7 = vmul.f32 1.442695, %v523_v3  ;;  %vm560_vm13 = vcmp.gt.f32.partialorder %v523_v3, 0.0 }
  0xb8   : > { %v1918_v44 = vadd.f32 -1.0, %v2061_v43  ;;  %v656_v61 = vsel %vm653_vm7, %v654_v59, %v655_v56  ;;  %v702_v62 = vmax.f32 %v620_v49, %v658_v58 }
  0xb9   : > { %v701_v1 = vmax.f32 %v619_v53, %v656_v61 }
  0xba   : > { %v2260_v48 = vsel %vm559_vm4, %v520_v32, %v1918_v44 }
  0xbb   : > { %v661_v50 = vrot.slane %v2260_v48, 1 }
  0xbc   : > { %v525_v52 = vpop.f32.mrf.mxu0 }
  0xbd   : > { %v662_v54 = vsel %vm653_vm7, %v659_v47, %v661_v50  ;;  %v526_v63 = vadd.f32 %v2253_v21, %v525_v52 }
  0xbe   : > { %v704_v57 = vmax.f32 %v622_v41, %v662_v54 }
  0xbf   : > { %v583_v5 = vmul.f32 1.442695, %v526_v63  ;;  %vm561_vm11 = vcmp.gt.f32.partialorder %v526_v63, 0.0 }
  0xc0   : > { %1930 = vmatpush.msk.msra.mxu1 %vm724_vm8, %v704_v57 }
  0xc2   : > { %741 = vmatpush.msra.mxu1 %v703_v60 }
  0xc4   : > { %v528_v0 = vpop.f32.mrf.mxu0  ;;  %742 = vmatpush.msra.mxu1 %v702_v62 }
  0xc5   : > { %v529_v4 = vadd.f32 %v2253_v21, %v528_v0 }
  0xc6   : > { %743 = vmatpush.msra.mxu1 %v701_v1 }
  0xc7   : > { %v585_v6 = vmul.f32 1.442695, %v529_v4  ;;  %1931 = vmatmul.msk.f32.vlgmr.msra.gmra.mxu1 %vm717_vm9, %v2274_v2  ;;  %vm562_vm10 = vcmp.gt.f32.partialorder %v529_v4, 0.0 }
  0xc9   : > { %2062 = vpow2.f32 %v585_v6 }
  0xca   : > { %2064 = vpow2.f32 %v583_v5 }
  0xcb   : > { %2066 = vpow2.f32 %v581_v7 }
  0xcc   : > { %v531_v8 = vpop.f32.mrf.mxu0 }
  0xcd   : > { %v532_v10 = vadd.f32 %v2253_v21, %v531_v8 }
  0xcf   : > { %v2063_v11 = vpop.eup %2062  ;;  %v587_v12 = vmul.f32 1.442695, %v532_v10  ;;  %1932 = vmatmul.msk.f32.gmra.mxu1 %vm717_vm9, %v2283_v9  ;;  %vm563_vm12 = vcmp.gt.f32.partialorder %v532_v10, 0.0 }
  0xd0   : > { %v2065_v13 = vpop.eup %2064  ;;  %v1921_v14 = vadd.f32 -1.0, %v2063_v11 }
  0xd1   : > { %2068 = vpow2.f32 %v587_v12  ;;  %v2067_v15 = vpop.eup %2066  ;;  %v1920_v17 = vadd.f32 -1.0, %v2065_v13 }
  0xd2   : > { %v626_v18 = vsel %vm562_vm10, %v529_v4, %v1921_v14  ;;  %v1919_v19 = vadd.f32 -1.0, %v2067_v15 }
  0xd3   : > { %v625_v23 = vsel %vm561_vm11, %v526_v63, %v1920_v17  ;;  %v667_v24 = vrot.slane %v626_v18, 1  ;;  %vm1167_vm11 = vcmask 1042432  }
  0xd4   : > { %v534_v16 = vpop.f32.mrf.mxu0  ;;  %v624_v26 = vsel %vm560_vm13, %v523_v3, %v1919_v19  ;;  %v665_v28 = vrot.slane %v625_v23, 1 }
  0xd5   : > { %v663_v32 = vrot.slane %v624_v26, 1  ;;  %v535_v41 = vadd.f32 %v2253_v21, %v534_v16 }
  0xd6   : > { %v668_v31 = vsel %vm653_vm7, %v665_v28, %v667_v24 }
  0xd7   : > { %v2069_v20 = vpop.eup %2068  ;;  %v666_v34 = vsel %vm653_vm7, %v663_v32, %v665_v28  ;;  %v707_v35 = vmax.f32 %v625_v23, %v668_v31  ;;  %v664_v36 = vsel %vm653_vm7, %v661_v50, %v663_v32  ;;  %v589_v45 = vmul.f32 1.442695, %v535_v41 }
  0xd8   : > { %v1922_v22 = vadd.f32 -1.0, %v2069_v20  ;;  %v706_v37 = vmax.f32 %v624_v26, %v666_v34  ;;  %v705_v40 = vmax.f32 %v2260_v48, %v664_v36  ;;  %vm564_vm1 = vcmp.gt.f32.partialorder %v535_v41, 0.0 }
  0xda   : > { %v2288_v25 = vsel %vm563_vm12, %v532_v10, %v1922_v22  ;;  %vm1163_vm12 = vcmask 89088  }
  0xdb   : > { %v669_v27 = vrot.slane %v2288_v25, 1 }
  0xdc   : > { %v537_v29 = vpop.f32.mrf.mxu0 }
  0xdd   : > { %v670_v30 = vsel %vm653_vm7, %v667_v24, %v669_v27  ;;  %v538_v38 = vadd.f32 %v2253_v21, %v537_v29 }
  0xde   : > { %v708_v33 = vmax.f32 %v626_v18, %v670_v30 }
  0xdf   : > { %v591_v43 = vmul.f32 1.442695, %v538_v38  ;;  %vm565_vm15 = vcmp.gt.f32.partialorder %v538_v38, 0.0 }
  0xe0   : > { %1933 = vmatpush.msk.msra.mxu2 %vm724_vm8, %v708_v33 }
  0xe2   : > { %767 = vmatpush.msra.mxu2 %v707_v35 }
  0xe4   : > { %v540_v39 = vpop.f32.mrf.mxu0  ;;  %768 = vmatpush.msra.mxu2 %v706_v37 }
  0xe5   : > { %v541_v42 = vadd.f32 %v2253_v21, %v540_v39  ;;  %v1942_v39 = vld [vmem:[%s2533_s4 + $0x8] sm:$0xff] }
  0xe6   : > { %769 = vmatpush.msra.mxu2 %v705_v40  ;;  %v847_v40 = vld [vmem:[%s2533_s4] sm:$0xff] }
  0xe7   : > { %v593_v44 = vmul.f32 1.442695, %v541_v42  ;;  %1934 = vmatmul.msk.f32.vlgmr.msra.gmra.mxu2 %vm717_vm9, %v2274_v2  ;;  %vm566_vm14 = vcmp.gt.f32.partialorder %v541_v42, 0.0 }
  0xe8   : > { %897 = vmatpush.msrb.mxu2 %v1942_v39 }
  0xe9   : > { %2070 = vpow2.f32 %v593_v44 }
  0xea   : > { %2072 = vpow2.f32 %v591_v43 }
  0xeb   : > { %2074 = vpow2.f32 %v589_v45 }
  0xec   : > { %v543_v46 = vpop.f32.mrf.mxu0 }
  0xed   : > { %v544_v47 = vadd.f32 %v2253_v21, %v543_v46 }
  0xef   : > { %v2071_v49 = vpop.eup %2070  ;;  %v595_v50 = vmul.f32 1.442695, %v544_v47  ;;  %1935 = vmatmul.msk.f32.gmra.mxu2 %vm717_vm9, %v2283_v9  ;;  %vm567_vm0 = vcmp.gt.f32.partialorder %v544_v47, 0.0 }
  0xf0   : > { %v2073_v48 = vpop.eup %2072  ;;  %v1925_v51 = vadd.f32 -1.0, %v2071_v49 }
  0xf1   : > { %2076 = vpow2.f32 %v595_v50  ;;  %v2075_v52 = vpop.eup %2074  ;;  %v1924_v54 = vadd.f32 -1.0, %v2073_v48 }
  0xf2   : > { %v630_v55 = vsel %vm566_vm14, %v541_v42, %v1925_v51  ;;  %v1923_v56 = vadd.f32 -1.0, %v2075_v52 }
  0xf3   : > { %v629_v59 = vsel %vm565_vm15, %v538_v38, %v1924_v54  ;;  %v675_v60 = vrot.slane %v630_v55, 1 }
  0xf4   : > { %v546_v53 = vpop.f32.mrf.mxu0  ;;  %v628_v62 = vsel %vm564_vm1, %v535_v41, %v1923_v56  ;;  %v673_v0 = vrot.slane %v629_v59, 1  ;;  %v1959_v41 = vld [vmem:[%s2533_s4 + $0x10] sm:$0xff] }
  0xf5   : > { %v547_v1 = vadd.f32 %v2253_v21, %v546_v53  ;;  %v671_v7 = vrot.slane %v628_v62, 1 }
  0xf6   : > { %v676_v6 = vsel %vm653_vm7, %v673_v0, %v675_v60 }
  0xf7   : > { %v2077_v57 = vpop.eup %2076  ;;  %v674_v11 = vsel %vm653_vm7, %v671_v7, %v673_v0  ;;  %v597_v12 = vmul.f32 1.442695, %v547_v1  ;;  %v711_v13 = vmax.f32 %v629_v59, %v676_v6  ;;  %v672_v14 = vsel %vm653_vm7, %v669_v27, %v671_v7 }
  0xf8   : > { %v1926_v58 = vadd.f32 -1.0, %v2077_v57  ;;  %v710_v15 = vmax.f32 %v628_v62, %v674_v11  ;;  %v709_v17 = vmax.f32 %v2288_v25, %v672_v14  ;;  %vm568_vm3 = vcmp.gt.f32.partialorder %v547_v1, 0.0 }
  0xfa   : > { %v631_v61 = vsel %vm567_vm0, %v544_v47, %v1926_v58 }
  0xfb   : > { %v677_v63 = vrot.slane %v631_v61, 1 }
  0xfc   : > { %v549_v3 = vpop.f32.mrf.mxu0 }
  0xfd   : > { %v550_v4 = vadd.f32 %v2253_v21, %v549_v3  ;;  %v678_v5 = vsel %vm653_vm7, %v675_v60, %v677_v63 }
  0xfe   : > { %v712_v8 = vmax.f32 %v630_v55, %v678_v5 }
  0xff   : > { %v599_v10 = vmul.f32 1.442695, %v550_v4  ;;  %vm569_vm2 = vcmp.gt.f32.partialorder %v550_v4, 0.0 }
 0x100   : > { %1936 = vmatpush.msk.msra.mxu3 %vm724_vm8, %v712_v8 }
 0x101   : > { %2078 = vpow2.f32 %v599_v10 }
 0x102   : > { %793 = vmatpush.msra.mxu3 %v711_v13  ;;  %2080 = vpow2.f32 %v597_v12 }
 0x104   : > { %v552_v16 = vpop.f32.mrf.mxu0  ;;  %794 = vmatpush.msra.mxu3 %v710_v15 }
 0x105   : > { %v553_v18 = vadd.f32 %v2253_v21, %v552_v16 }
 0x106   : > { %795 = vmatpush.msra.mxu3 %v709_v17  ;;  %v2376_v17 = vld [vmem:[%s2534_s5] ss:$0 sm:$0xff] }
 0x107   : > { %v601_v19 = vmul.f32 1.442695, %v553_v18  ;;  %1937 = vmatmul.msk.f32.vlgmr.msra.gmra.mxu3 %vm717_vm9, %v2274_v2  ;;  %v2079_v20 = vpop.eup %2078  ;;  %vm570_vm4 = vcmp.gt.f32.partialorder %v553_v18, 0.0 }
 0x108   : > { %v2081_v22 = vpop.eup %2080  ;;  %v1928_v23 = vadd.f32 -1.0, %v2079_v20  ;;  %962 = vmatpush.msrb.mxu3 %v847_v40 }
 0x109   : > { %2082 = vpow2.f32 %v601_v19  ;;  %v1927_v24 = vadd.f32 -1.0, %v2081_v22 }
 0x10a   : > { %v633_v27 = vsel %vm569_vm2, %v550_v4, %v1928_v23  ;;  %vm1260_vm2 = vcmask 128000  }
 0x10b   : > { %v632_v21 = vsel %vm568_vm3, %v547_v1, %v1927_v24  ;;  %v681_v29 = vrot.slane %v633_v27, 1  ;;  %vm1278_vm3 = vcmask 130048  }
 0x10c   : > { %v679_v31 = vrot.slane %v632_v21, 1 }
 0x10e   : > { %v682_v35 = vsel %vm653_vm7, %v679_v31, %v681_v29  ;;  %v680_v36 = vsel %vm653_vm7, %v677_v63, %v679_v31 }
 0x10f   : > { %v2083_v26 = vpop.eup %2082  ;;  %1938 = vmatmul.msk.f32.gmra.mxu3 %vm717_vm9, %v2283_v9  ;;  %v714_v37 = vmax.f32 %v632_v21, %v682_v35  ;;  %v713_v38 = vmax.f32 %v631_v61, %v680_v36 }
 0x110   : > { %v1929_v28 = vadd.f32 -1.0, %v2083_v26 }
 0x112   : > { %v634_v25 = vsel %vm570_vm4, %v553_v18, %v1929_v28 }
 0x113   : > { %v683_v30 = vrot.slane %v634_v25, 1 }
 0x115   : > { %v716_v32 = vmax.f32 %v634_v25, %v683_v30  ;;  %v684_v33 = vsel %vm653_vm7, %v681_v29, %v683_v30 }
 0x116   : > { %v715_v34 = vmax.f32 %v633_v27, %v684_v33 }
 0x117   : > { %1939 = vmatpush.msk.msrb.mxu1 %vm724_vm8, %v716_v32 }
 0x119   : > { %819 = vmatpush.msrb.mxu1 %v715_v34 }
 0x11b   : > { %820 = vmatpush.msrb.mxu1 %v714_v37 }
 0x11d   : > { %821 = vmatpush.msrb.mxu1 %v713_v38 }
 0x11e   : > { %1940 = vmatmul.msk.f32.vlgmr.msrb.gmra.mxu1 %vm717_vm9, %v2274_v2 }
 0x11f   : > { %1037 = vmatpush.msra.mxu1 %v1959_v41 }
 0x126   : > { %1941 = vmatmul.msk.f32.gmra.mxu1 %vm717_vm9, %v2283_v9 }
 0x144   : > { %v745_v2 = vpop.f32.mrf.mxu1 }
 0x145   : > { %830 = vst.msk [vmem:[#allocation2] sm:$0xff] %vm829_vm5, %v745_v2 }
 0x14c   : > { %v748_v9 = vpop.f32.mrf.mxu1  ;;  %v839_v42 = vld [vmem:[#allocation2] sm:$0xff] }
 0x14d   : > { %832 = vst.msk [vmem:[#allocation2 + $0x8] sm:$0x7f] %vm831_vm6, %v748_v9  ;;  %1951 = vmatmul.msk.f32.vlgmr.msrb.gmra.mxu3 %vm829_vm5, %v839_v42 }
 0x154   : > { %v848_v43 = vld [vmem:[#allocation2 + $0x1] sm:$0xff] }
 0x155   : > { %v988_v44 = vld [vmem:[#allocation2 + $0x2] sm:$0xff]  ;;  %1943 = vmatmul.msk.f32.vlgmr.msrb.gmra.mxu2 %vm829_vm5, %v848_v43 }
 0x156   : > { %v840_v45 = vld [vmem:[#allocation2 + $0x8] sm:$0xff]  ;;  %1960 = vmatmul.msk.f32.vlgmr.msra.gmra.mxu1 %vm829_vm5, %v988_v44 }
 0x157   : > { %1952 = vmatmul.msk.f32.gmra.mxu3 %vm829_vm5, %v840_v45 }
 0x16a   : > { %v771_v46 = vpop.f32.mrf.mxu2 }
 0x16b   : > { %833 = vst.msk [vmem:[#allocation2 + $0x10] sm:$0xff] %vm829_vm5, %v771_v46 }
 0x172   : > { %v774_v47 = vpop.f32.mrf.mxu2  ;;  %v849_v49 = vld [vmem:[#allocation2 + $0x9] sm:$0xff] }
 0x173   : > { %v841_v50 = vld [vmem:[#allocation2 + $0x10] sm:$0xff]  ;;  %834 = vst.msk [vmem:[#allocation2 + $0x18] sm:$0x7f] %vm831_vm6, %v774_v47  ;;  %1944 = vmatmul.msk.f32.gmra.mxu2 %vm829_vm5, %v849_v49 }
 0x174   : > { %v989_v48 = vld [vmem:[#allocation2 + $0xa] sm:$0xff]  ;;  %1953 = vmatmul.msk.f32.gmra.mxu3 %vm829_vm5, %v841_v50  ;;  %v2390_v50 = vld [vmem:[%s2535_s6] sm:$0x3f] }
 0x175   : > { %1961 = vmatmul.msk.f32.gmra.mxu1 %vm829_vm5, %v989_v48 }
 0x17a   : > { %v850_v51 = vld [vmem:[#allocation2 + $0x11] sm:$0xff] }
 0x17b   : > { %v990_v52 = vld [vmem:[#allocation2 + $0x12] sm:$0xff]  ;;  %1945 = vmatmul.msk.f32.gmra.mxu2 %vm829_vm5, %v850_v51 }
 0x17c   : > { %v842_v53 = vld [vmem:[#allocation2 + $0x18] sm:$0xff] }
 0x17d   : > { %1954 = vmatmul.msk.f32.gmra.mxu3 %vm829_vm5, %v842_v53  ;;  %1962 = vmatmul.msk.f32.gmra.mxu1 %vm829_vm5, %v990_v52 }
 0x18a   : > { %v797_v54 = vpop.f32.mrf.mxu3 }
 0x18b   : > { %835 = vst.msk [vmem:[#allocation2 + $0x20] sm:$0xff] %vm829_vm5, %v797_v54 }
 0x192   : > { %v800_v55 = vpop.f32.mrf.mxu3  ;;  %v851_v56 = vld [vmem:[#allocation2 + $0x19] sm:$0xff] }
 0x193   : > { %v991_v57 = vld [vmem:[#allocation2 + $0x1a] sm:$0xff]  ;;  %836 = vst.msk [vmem:[#allocation2 + $0x28] sm:$0x7f] %vm831_vm6, %v800_v55  ;;  %1946 = vmatmul.msk.f32.gmra.mxu2 %vm829_vm5, %v851_v56 }
 0x194   : > { %v843_v58 = vld [vmem:[#allocation2 + $0x20] sm:$0xff]  ;;  %1963 = vmatmul.msk.f32.gmra.mxu1 %vm829_vm5, %v991_v57 }
 0x195   : > { %1955 = vmatmul.msk.f32.gmra.mxu3 %vm829_vm5, %v843_v58 }
 0x19a   : > { %v852_v59 = vld [vmem:[#allocation2 + $0x21] sm:$0xff] }
 0x19b   : > { %v992_v60 = vld [vmem:[#allocation2 + $0x22] sm:$0xff]  ;;  %v823_v62 = vpop.f32.mrf.mxu1  ;;  %1947 = vmatmul.msk.f32.gmra.mxu2 %vm829_vm5, %v852_v59 }
 0x19c   : > { %v844_v61 = vld [vmem:[#allocation2 + $0x28] sm:$0xff]  ;;  %1964 = vmatmul.msk.f32.gmra.mxu1 %vm829_vm5, %v992_v60  ;;  %837 = vst.msk [vmem:[#allocation2 + $0x30] sm:$0xff] %vm829_vm5, %v823_v62 }
 0x19d   : > { %1956 = vmatmul.msk.f32.gmra.mxu3 %vm829_vm5, %v844_v61 }
 0x1a3   : > { %v826_v63 = vpop.f32.mrf.mxu1  ;;  %v853_v0 = vld [vmem:[#allocation2 + $0x29] sm:$0xff] }
 0x1a4   : > { %v845_v1 = vld [vmem:[#allocation2 + $0x30] sm:$0xff]  ;;  %838 = vst.msk [vmem:[#allocation2 + $0x38] sm:$0x7f] %vm831_vm6, %v826_v63  ;;  %1948 = vmatmul.msk.f32.gmra.mxu2 %vm829_vm5, %v853_v0  ;;  %vm1461_vm6 = vcmask 23552  }
 0x1a5   : > { %v993_v3 = vld [vmem:[#allocation2 + $0x2a] sm:$0xff]  ;;  %1957 = vmatmul.msk.f32.gmra.mxu3 %vm829_vm5, %v845_v1 }
 0x1a6   : > { %1965 = vmatmul.msk.f32.gmra.mxu1 %vm829_vm5, %v993_v3 }
 0x1ab   : > { %v854_v4 = vld [vmem:[#allocation2 + $0x31] sm:$0xff]  ;;  %v855_v7 = vld [vmem:[#allocation2 + $0x39] sm:$0xff] }
 0x1ac   : > { %v846_v5 = vld [vmem:[#allocation2 + $0x38] sm:$0xff]  ;;  %1949 = vmatmul.msk.f32.gmra.mxu2 %vm829_vm5, %v854_v4 }
 0x1ad   : > { %v994_v6 = vld [vmem:[#allocation2 + $0x32] sm:$0xff]  ;;  %1958 = vmatmul.msk.f32.gmra.mxu3 %vm829_vm5, %v846_v5  ;;  %v995_v8 = vld [vmem:[#allocation2 + $0x3a] sm:$0xff] }
 0x1ae   : > { %1966 = vmatmul.msk.f32.gmra.mxu1 %vm829_vm5, %v994_v6 }
 0x1b4   : > { %1950 = vmatmul.msk.f32.gmra.mxu2 %vm829_vm5, %v855_v7 }
 0x1b6   : > { %1967 = vmatmul.msk.f32.gmra.mxu1 %vm829_vm5, %v995_v8 }
 0x1d0   : > { %v964_v10 = vpop.f32.mrf.mxu3 }
 0x1d3   : > { %v1039_v11 = vpop.f32.mrf.mxu1 }
 0x1d8   : > { %v899_v12 = vpop.f32.mrf.mxu2 }
 0x1d9   : > { %v965_v13 = vadd.f32 %v964_v10, %v899_v12 }
 0x1da   : > { %v967_v14 = vpop.f32.mrf.mxu3 }
 0x1db   : > { %v1063_v16 = vadd.f32 %v1039_v11, %v965_v13 }
 0x1dd   : > { %v1075_v20 = vadd.f32 %v2376_v17, %v1063_v16 }
 0x1df   : > { %v1091_v26 = vmul.f32 1.442695, %v1075_v20  ;;  %vm1083_vm8 = vcmp.gt.f32.partialorder %v1075_v20, 0.0 }
 0x1f2   : > { %v1042_v15 = vpop.f32.mrf.mxu1 }
 0x1f6   : > { %v902_v18 = vpop.f32.mrf.mxu2 }
 0x1f7   : > { %v968_v19 = vadd.f32 %v967_v14, %v902_v18  ;;  %v970_v24 = vpop.f32.mrf.mxu3 }
 0x1f9   : > { %v1064_v22 = vadd.f32 %v1042_v15, %v968_v19 }
 0x1fa   : > { %v1045_v21 = vpop.f32.mrf.mxu1 }
 0x1fb   : > { %v1076_v23 = vadd.f32 %v2376_v17, %v1064_v22 }
 0x1fd   : > { %v1093_v27 = vmul.f32 1.442695, %v1076_v23  ;;  %vm1084_vm9 = vcmp.gt.f32.partialorder %v1076_v23, 0.0 }
 0x1fe   : > { %v905_v28 = vpop.f32.mrf.mxu2 }
 0x1ff   : > { %2084 = vpow2.f32 %v1093_v27  ;;  %v971_v25 = vadd.f32 %v970_v24, %v905_v28 }
 0x200   : > { %2086 = vpow2.f32 %v1091_v26  ;;  %v973_v41 = vpop.f32.mrf.mxu3 }
 0x201   : > { %v1065_v29 = vadd.f32 %v1045_v21, %v971_v25 }
 0x203   : > { %v1077_v30 = vadd.f32 %v2376_v17, %v1065_v29 }
 0x205   : > { %v2085_v31 = vpop.eup %2084  ;;  %v1095_v32 = vmul.f32 1.442695, %v1077_v30  ;;  %vm1085_vm10 = vcmp.gt.f32.partialorder %v1077_v30, 0.0 }
 0x206   : > { %v2087_v33 = vpop.eup %2086  ;;  %v1969_v34 = vadd.f32 -1.0, %v2085_v31 }
 0x207   : > { %2088 = vpow2.f32 %v1095_v32  ;;  %v1968_v35 = vadd.f32 -1.0, %v2087_v33 }
 0x208   : > { %v1116_v36 = vsel %vm1084_vm9, %v1076_v23, %v1969_v34 }
 0x209   : > { %v1115_v39 = vsel %vm1083_vm8, %v1075_v20, %v1968_v35  ;;  %v1133_v40 = vrot.slane %v1116_v36, 1 }
 0x20a   : > { %v1132_v43 = vrot.slane %v1115_v39, 1 }
 0x20c   : > { %v1134_v45 = vsel %vm653_vm7, %v1132_v43, %v1133_v40 }
 0x20d   : > { %v2089_v37 = vpop.eup %2088  ;;  %v1155_v49 = vmax.f32 %v1115_v39, %v1134_v45 }
 0x20e   : > { %v1970_v38 = vadd.f32 -1.0, %v2089_v37 }
 0x210   : > { %v2381_v2 = vsel %vm1085_vm10, %v1077_v30, %v1970_v38  ;;  %vm1615_vm10 = vcmask 24576  }
 0x211   : > { %v1135_v9 = vrot.slane %v2381_v2, 1  ;;  %v1048_v42 = vpop.f32.mrf.mxu1 }
 0x213   : > { %v1136_v44 = vsel %vm653_vm7, %v1133_v40, %v1135_v9 }
 0x214   : > { %v1156_v46 = vmax.f32 %v1116_v36, %v1136_v44 }
 0x216   : > { %v908_v47 = vpop.f32.mrf.mxu2  ;;  %1976 = vmatpush.msk.msra.mxu2 %vm1167_vm11, %v1156_v46 }
 0x217   : > { %v974_v48 = vadd.f32 %v973_v41, %v908_v47 }
 0x218   : > { %1186 = vmatpush.msra.mxu2 %v1155_v49  ;;  %v976_v52 = vpop.f32.mrf.mxu3 }
 0x219   : > { %v1066_v51 = vadd.f32 %v1048_v42, %v974_v48  ;;  %1977 = vmatmul.msk.f32.vlgmr.msra.gmra.mxu2 %vm1163_vm12, %v2390_v50  ;;  %v1051_v54 = vpop.f32.mrf.mxu1  ;;  %v1270_v48 = vld [vmem:[%s2536_s7 + $0x8] sm:$0xff] }
 0x21b   : > { %v1078_v53 = vadd.f32 %v2376_v17, %v1066_v51  ;;  %v1269_v51 = vld [vmem:[%s2536_s7] sm:$0xff] }
 0x21d   : > { %v1097_v55 = vmul.f32 1.442695, %v1078_v53  ;;  %vm1086_vm13 = vcmp.gt.f32.partialorder %v1078_v53, 0.0 }
 0x21e   : > { %v911_v56 = vpop.f32.mrf.mxu2 }
 0x21f   : > { %2090 = vpow2.f32 %v1097_v55  ;;  %v977_v57 = vadd.f32 %v976_v52, %v911_v56  ;;  %v1994_v55 = vld [vmem:[%s2536_s7 + $0x20] sm:$0xff] }
 0x220   : > { %v979_v60 = vpop.f32.mrf.mxu3 }
 0x221   : > { %v1067_v58 = vadd.f32 %v1051_v54, %v977_v57  ;;  %v1984_v54 = vld [vmem:[%s2536_s7 + $0x10] sm:$0xff] }
 0x223   : > { %v1079_v59 = vadd.f32 %v2376_v17, %v1067_v58  ;;  %v1054_v63 = vpop.f32.mrf.mxu1 }
 0x225   : > { %v2091_v61 = vpop.eup %2090  ;;  %v1099_v62 = vmul.f32 1.442695, %v1079_v59  ;;  %vm1087_vm14 = vcmp.gt.f32.partialorder %v1079_v59, 0.0 }
 0x226   : > { %v1971_v1 = vadd.f32 -1.0, %v2091_v61 }
 0x227   : > { %2092 = vpow2.f32 %v1099_v62  ;;  %v914_v0 = vpop.f32.mrf.mxu2 }
 0x228   : > { %v980_v3 = vadd.f32 %v979_v60, %v914_v0  ;;  %v1118_v5 = vsel %vm1086_vm13, %v1078_v53, %v1971_v1  ;;  %v982_v8 = vpop.f32.mrf.mxu3  ;;  %v1985_v53 = vld [vmem:[%s2536_s7 + $0x18] sm:$0xff] }
 0x229   : > { %v1137_v12 = vrot.slane %v1118_v5, 1  ;;  %1305 = vmatpush.msrb.mxu1 %v1985_v53 }
 0x22a   : > { %v1068_v4 = vadd.f32 %v1054_v63, %v980_v3 }
 0x22b   : > { %v1057_v13 = vpop.f32.mrf.mxu1  ;;  %v1138_v22 = vsel %vm653_vm7, %v1135_v9, %v1137_v12  ;;  %1306 = vmatpush.msrb.mxu1 %v1984_v54 }
 0x22c   : > { %v1080_v6 = vadd.f32 %v2376_v17, %v1068_v4  ;;  %v1157_v28 = vmax.f32 %v2381_v2, %v1138_v22 }
 0x22d   : > { %v2093_v7 = vpop.eup %2092 }
 0x22e   : > { %v1972_v10 = vadd.f32 -1.0, %v2093_v7  ;;  %v1101_v11 = vmul.f32 1.442695, %v1080_v6  ;;  %vm1088_vm15 = vcmp.gt.f32.partialorder %v1080_v6, 0.0 }
 0x22f   : > { %v917_v14 = vpop.f32.mrf.mxu2 }
 0x230   : > { %v1119_v15 = vsel %vm1087_vm14, %v1079_v59, %v1972_v10  ;;  %2094 = vpow2.f32 %v1101_v11  ;;  %v983_v16 = vadd.f32 %v982_v8, %v917_v14  ;;  %v985_v21 = vpop.f32.mrf.mxu3  ;;  %v2051_v14 = vld [vmem:[%s2537_s8] ss:$0 sm:$0xff] }
 0x231   : > { %v1139_v18 = vrot.slane %v1119_v15, 1 }
 0x232   : > { %v1069_v19 = vadd.f32 %v1057_v13, %v983_v16 }
 0x233   : > { %v1140_v20 = vsel %vm653_vm7, %v1137_v12, %v1139_v18  ;;  %v1060_v31 = vpop.f32.mrf.mxu1 }
 0x234   : > { %v1081_v23 = vadd.f32 %v2376_v17, %v1069_v19  ;;  %v1158_v24 = vmax.f32 %v1118_v5, %v1140_v20 }
 0x236   : > { %v2095_v26 = vpop.eup %2094  ;;  %v1103_v27 = vmul.f32 1.442695, %v1081_v23  ;;  %1978 = vmatpush.msk.msra.mxu3 %vm1167_vm11, %v1158_v24  ;;  %vm1089_vm0 = vcmp.gt.f32.partialorder %v1081_v23, 0.0 }
 0x237   : > { %v920_v25 = vpop.f32.mrf.mxu2  ;;  %v1973_v30 = vadd.f32 -1.0, %v2095_v26 }
 0x238   : > { %2096 = vpow2.f32 %v1103_v27  ;;  %v986_v29 = vadd.f32 %v985_v21, %v920_v25  ;;  %1209 = vmatpush.msra.mxu3 %v1157_v28 }
 0x239   : > { %1979 = vmatmul.msk.f32.vlgmr.msra.gmra.mxu3 %vm1163_vm12, %v2390_v50  ;;  %v1120_v34 = vsel %vm1088_vm15, %v1080_v6, %v1973_v30 }
 0x23a   : > { %v1070_v32 = vadd.f32 %v1060_v31, %v986_v29  ;;  %v1141_v38 = vrot.slane %v1120_v34, 1 }
 0x23c   : > { %v1082_v33 = vadd.f32 %v2376_v17, %v1070_v32  ;;  %v1142_v2 = vsel %vm653_vm7, %v1139_v18, %v1141_v38 }
 0x23d   : > { %v1159_v44 = vmax.f32 %v1119_v15, %v1142_v2 }
 0x23e   : > { %v2097_v35 = vpop.eup %2096  ;;  %v1105_v36 = vmul.f32 1.442695, %v1082_v33  ;;  %vm1090_vm1 = vcmp.gt.f32.partialorder %v1082_v33, 0.0 }
 0x23f   : > { %v1974_v37 = vadd.f32 -1.0, %v2097_v35 }
 0x240   : > { %2098 = vpow2.f32 %v1105_v36 }
 0x241   : > { %v1121_v39 = vsel %vm1089_vm0, %v1081_v23, %v1974_v37 }
 0x242   : > { %v1143_v40 = vrot.slane %v1121_v39, 1 }
 0x244   : > { %v1144_v41 = vsel %vm653_vm7, %v1141_v38, %v1143_v40 }
 0x245   : > { %v1160_v9 = vmax.f32 %v1120_v34, %v1144_v41 }
 0x246   : > { %v2099_v42 = vpop.eup %2098 }
 0x247   : > { %v1975_v43 = vadd.f32 -1.0, %v2099_v42  ;;  %1980 = vmatpush.msk.msrb.mxu2 %vm1167_vm11, %v1160_v9 }
 0x249   : > { %v1122_v17 = vsel %vm1090_vm1, %v1082_v33, %v1975_v43  ;;  %1232 = vmatpush.msrb.mxu2 %v1159_v44 }
 0x24a   : > { %v1145_v45 = vrot.slane %v1122_v17, 1  ;;  %1981 = vmatmul.msk.f32.vlgmr.msrb.gmra.mxu2 %vm1163_vm12, %v2390_v50 }
 0x24b   : > { %1346 = vmatpush.msra.mxu2 %v1270_v48 }
 0x24c   : > { %v1162_v46 = vmax.f32 %v1122_v17, %v1145_v45  ;;  %v1146_v47 = vsel %vm653_vm7, %v1143_v40, %v1145_v45  ;;  %v1441_v45 = vld [vmem:[%s2538_s9] sm:$0x3] }
 0x24d   : > { %v1161_v49 = vmax.f32 %v1121_v39, %v1146_v47  ;;  %1347 = vmatpush.msra.mxu2 %v1269_v51  ;;  %v2014_v51 = vld [vmem:[%s2539_s10 + $0x30] sm:$0xff] }
 0x24e   : > { %1982 = vmatpush.msk.msrb.mxu3 %vm1167_vm11, %v1162_v46 }
 0x250   : > { %1255 = vmatpush.msrb.mxu3 %v1161_v49  ;;  %v2015_v49 = vld [vmem:[%s2539_s10 + $0x38] sm:$0xff] }
 0x251   : > { %1983 = vmatmul.msk.f32.vlgmr.msrb.gmra.mxu3 %vm1163_vm12, %v2390_v50  ;;  %v1995_v50 = vld [vmem:[%s2536_s7 + $0x28] sm:$0xff] }
 0x252   : > { %1394 = vmatpush.msra.mxu3 %v1995_v50 }
 0x254   : > { %1395 = vmatpush.msra.mxu3 %v1994_v55 }
 0x29c   : > { %v1188_v52 = vpop.f32.mrf.mxu2 }
 0x29d   : > { %1261 = vst.msk [vmem:[#allocation2] sm:$0x3f] %vm1260_vm2, %v1188_v52 }
 0x2a4   : > { %v1265_v56 = vld [vmem:[#allocation2] sm:$0xff] }
 0x2a5   : > { %1990 = vmatmul.msk.f32.vlgmr.msra.gmra.mxu2 %vm1278_vm3, %v1265_v56  ;;  %v1560_v56 = vld [vmem:[%s2539_s10 + $0x18] sm:$0xff] }
 0x2bc   : > { %v1211_v57 = vpop.f32.mrf.mxu3 }
 0x2bd   : > { %1262 = vst.msk [vmem:[#allocation2 + $0x8] sm:$0x3f] %vm1260_vm2, %v1211_v57 }
 0x2c4   : > { %v1271_v58 = vld [vmem:[#allocation2 + $0x1] sm:$0xff] }
 0x2c5   : > { %v1266_v59 = vld [vmem:[#allocation2 + $0x8] sm:$0xff]  ;;  %1986 = vmatmul.msk.f32.vlgmr.msrb.gmra.mxu1 %vm1278_vm3, %v1271_v58  ;;  %v1559_v58 = vld [vmem:[%s2539_s10 + $0x10] sm:$0xff] }
 0x2c6   : > { %v1361_v60 = vld [vmem:[#allocation2 + $0x2] sm:$0xff]  ;;  %1991 = vmatmul.msk.f32.gmra.mxu2 %vm1278_vm3, %v1266_v59 }
 0x2c7   : > { %1996 = vmatmul.msk.f32.vlgmr.msra.gmra.mxu3 %vm1278_vm3, %v1361_v60 }
 0x2cd   : > { %v1234_v61 = vpop.f32.mrf.mxu2 }
 0x2ce   : > { %1263 = vst.msk [vmem:[#allocation2 + $0x10] sm:$0x3f] %vm1260_vm2, %v1234_v61 }
 0x2d4   : > { %v1257_v62 = vpop.f32.mrf.mxu3 }
 0x2d5   : > { %1264 = vst.msk [vmem:[#allocation2 + $0x18] sm:$0x3f] %vm1260_vm2, %v1257_v62  ;;  %v1272_v63 = vld [vmem:[#allocation2 + $0x9] sm:$0xff] }
 0x2d6   : > { %v1267_v0 = vld [vmem:[#allocation2 + $0x10] sm:$0xff]  ;;  %1987 = vmatmul.msk.f32.gmra.mxu1 %vm1278_vm3, %v1272_v63 }
 0x2d7   : > { %v1362_v1 = vld [vmem:[#allocation2 + $0xa] sm:$0xff]  ;;  %1992 = vmatmul.msk.f32.gmra.mxu2 %vm1278_vm3, %v1267_v0 }
 0x2d8   : > { %1997 = vmatmul.msk.f32.gmra.mxu3 %vm1278_vm3, %v1362_v1  ;;  %v2013_v0 = vld [vmem:[%s2539_s10 + $0x28] sm:$0xff] }
 0x2d9   : > { %v1558_v1 = vld [vmem:[%s2539_s10 + $0x8] sm:$0xff] }
 0x2dc   : > { %v1273_v3 = vld [vmem:[#allocation2 + $0x11] sm:$0xff]  ;;  %v1274_v6 = vld [vmem:[#allocation2 + $0x19] sm:$0xff] }
 0x2dd   : > { %v1268_v4 = vld [vmem:[#allocation2 + $0x18] sm:$0xff] }
 0x2de   : > { %v1363_v5 = vld [vmem:[#allocation2 + $0x12] sm:$0xff]  ;;  %1988 = vmatmul.msk.f32.gmra.mxu1 %vm1278_vm3, %v1273_v3  ;;  %v1364_v7 = vld [vmem:[#allocation2 + $0x1a] sm:$0xff] }
 0x2df   : > { %1993 = vmatmul.msk.f32.gmra.mxu2 %vm1278_vm3, %v1268_v4  ;;  %v2012_v3 = vld [vmem:[%s2539_s10 + $0x20] sm:$0xff] }
 0x2e0   : > { %1998 = vmatmul.msk.f32.gmra.mxu3 %vm1278_vm3, %v1363_v5  ;;  %v1557_v4 = vld [vmem:[%s2539_s10] sm:$0xff] }
 0x2e6   : > { %1989 = vmatmul.msk.f32.gmra.mxu1 %vm1278_vm3, %v1274_v6 }
 0x2e8   : > { %1999 = vmatmul.msk.f32.gmra.mxu3 %vm1278_vm3, %v1364_v7 }
 0x328   : > { %v1349_v10 = vpop.f32.mrf.mxu2 }
 0x342   : > { %v1308_v8 = vpop.f32.mrf.mxu1 }
 0x343   : > { %v1350_v12 = vadd.f32 %v1349_v10, %v1308_v8 }
 0x349   : > { %v1352_v18 = vpop.f32.mrf.mxu2 }
 0x34a   : > { %v1397_v11 = vpop.f32.mrf.mxu3 }
 0x34b   : > { %v1409_v13 = vadd.f32 %v1397_v11, %v1350_v12 }
 0x34d   : > { %v1417_v15 = vadd.f32 %v2051_v14, %v1409_v13 }
 0x34f   : > { %v1425_v19 = vmul.f32 1.442695, %v1417_v15  ;;  %vm1421_vm4 = vcmp.gt.f32.partialorder %v1417_v15, 0.0 }
 0x351   : > { %2100 = vpow2.f32 %v1425_v19 }
 0x353   : > { %v1311_v16 = vpop.f32.mrf.mxu1 }
 0x354   : > { %v1353_v20 = vadd.f32 %v1352_v18, %v1311_v16  ;;  %v1613_v16 = vld [vmem:[%s2540_s11] sm:$0x1] }
 0x357   : > { %v2101_v21 = vpop.eup %2100 }
 0x358   : > { %v2000_v31 = vadd.f32 -1.0, %v2101_v21 }
 0x35a   : > { %v1355_v27 = vpop.f32.mrf.mxu2  ;;  %v1437_v38 = vsel %vm1421_vm4, %v1417_v15, %v2000_v31 }
 0x35b   : > { %v1400_v22 = vpop.f32.mrf.mxu3  ;;  %v1314_v24 = vpop.f32.mrf.mxu1  ;;  %v1446_v42 = vrot.slane %v1437_v38, 1 }
 0x35c   : > { %v1410_v23 = vadd.f32 %v1400_v22, %v1353_v20  ;;  %v1356_v25 = vadd.f32 %v1355_v27, %v1314_v24  ;;  %v1683_v24 = vld [vmem:[%s2540_s11] sm:$0x1] }
 0x35e   : > { %v1418_v26 = vadd.f32 %v2051_v14, %v1410_v23 }
 0x360   : > { %v1427_v28 = vmul.f32 1.442695, %v1418_v26  ;;  %vm1422_vm5 = vcmp.gt.f32.partialorder %v1418_v26, 0.0 }
 0x362   : > { %2102 = vpow2.f32 %v1427_v28  ;;  %v1358_v37 = vpop.f32.mrf.mxu2 }
 0x363   : > { %v1403_v29 = vpop.f32.mrf.mxu3  ;;  %v1317_v33 = vpop.f32.mrf.mxu1 }
 0x364   : > { %v1411_v30 = vadd.f32 %v1403_v29, %v1356_v25  ;;  %v1359_v39 = vadd.f32 %v1358_v37, %v1317_v33  ;;  %v1753_v29 = vld [vmem:[%s2540_s11] sm:$0x1] }
 0x366   : > { %v1419_v32 = vadd.f32 %v2051_v14, %v1411_v30 }
 0x368   : > { %v2103_v34 = vpop.eup %2102  ;;  %v1429_v35 = vmul.f32 1.442695, %v1419_v32  ;;  %vm1423_vm8 = vcmp.gt.f32.partialorder %v1419_v32, 0.0 }
 0x369   : > { %v2001_v36 = vadd.f32 -1.0, %v2103_v34 }
 0x36a   : > { %2104 = vpow2.f32 %v1429_v35 }
 0x36b   : > { %v1438_v40 = vsel %vm1422_vm5, %v1418_v26, %v2001_v36  ;;  %v1406_v41 = vpop.f32.mrf.mxu3  ;;  %v1823_v36 = vld [vmem:[%s2540_s11] sm:$0x1] }
 0x36c   : > { %v1447_v2 = vrot.slane %v1438_v40, 1  ;;  %v1412_v9 = vadd.f32 %v1406_v41, %v1359_v39 }
 0x36e   : > { %v1420_v43 = vadd.f32 %v2051_v14, %v1412_v9  ;;  %v1448_v44 = vsel %vm653_vm7, %v1446_v42, %v1447_v2 }
 0x36f   : > { %v1457_v17 = vmax.f32 %v1437_v38, %v1448_v44 }
 0x370   : > { %v2105_v46 = vpop.eup %2104  ;;  %v1431_v47 = vmul.f32 1.442695, %v1420_v43  ;;  %vm1424_vm9 = vcmp.gt.f32.partialorder %v1420_v43, 0.0 }
 0x371   : > { %v2002_v48 = vadd.f32 -1.0, %v2105_v46  ;;  %2004 = vmatpush.msk.msrb.mxu0 %vm1167_vm11, %v1457_v17 }
 0x372   : > { %2106 = vpow2.f32 %v1431_v47  ;;  %2005 = vmatmul.msk.f32.vlgmr.msrb.gmra.mxu0 %vm1461_vm6, %v1441_v45 }
 0x373   : > { %v1439_v52 = vsel %vm1423_vm8, %v1419_v32, %v2002_v48  ;;  %1583 = vmatpush.msra.mxu0 %v2015_v49 }
 0x374   : > { %v1449_v53 = vrot.slane %v1439_v52, 1 }
 0x375   : > { %1584 = vmatpush.msra.mxu0 %v2014_v51 }
 0x376   : > { %v1450_v50 = vsel %vm653_vm7, %v1447_v2, %v1449_v53 }
 0x377   : > { %v1458_v54 = vmax.f32 %v1438_v40, %v1450_v50  ;;  %1585 = vmatpush.msra.mxu0 %v2013_v0 }
 0x378   : > { %v2107_v55 = vpop.eup %2106 }
 0x379   : > { %v2003_v57 = vadd.f32 -1.0, %v2107_v55  ;;  %2006 = vmatpush.msk.msra.mxu1 %vm1167_vm11, %v1458_v54  ;;  %1586 = vmatpush.msra.mxu0 %v2012_v3 }
 0x37a   : > { %2007 = vmatmul.msk.f32.vlgmr.msra.gmra.mxu1 %vm1461_vm6, %v1441_v45 }
 0x37b   : > { %v1440_v59 = vsel %vm1424_vm9, %v1420_v43, %v2003_v57  ;;  %1605 = vmatpush.msrb.mxu1 %v1560_v56  ;;  %1723 = vmatpush.msrb.mxu0 %v2015_v49 }
 0x37c   : > { %v1451_v60 = vrot.slane %v1440_v59, 1 }
 0x37d   : > { %1606 = vmatpush.msrb.mxu1 %v1559_v58  ;;  %1724 = vmatpush.msrb.mxu0 %v2014_v51 }
 0x37e   : > { %v1452_v61 = vsel %vm653_vm7, %v1449_v53, %v1451_v60  ;;  %v1460_v62 = vmax.f32 %v1440_v59, %v1451_v60  ;;  %vm1568_vm7 = vcmask 261120  }
 0x37f   : > { %v1459_v63 = vmax.f32 %v1439_v52, %v1452_v61  ;;  %1607 = vmatpush.msrb.mxu1 %v1558_v1  ;;  %1725 = vmatpush.msrb.mxu0 %v2013_v0 }
 0x380   : > { %2010 = vmatpush.msk.msrb.mxu3 %vm1167_vm11, %v1460_v62 }
 0x381   : > { %2008 = vmatpush.msk.msrb.mxu2 %vm1167_vm11, %v1459_v63  ;;  %2011 = vmatmul.msk.f32.vlgmr.msrb.gmra.mxu3 %vm1461_vm6, %v1441_v45 }
 0x382   : > { %2009 = vmatmul.msk.f32.vlgmr.msrb.gmra.mxu2 %vm1461_vm6, %v1441_v45  ;;  %1675 = vmatpush.msra.mxu3 %v1560_v56 }
 0x383   : > { %1653 = vmatpush.msra.mxu2 %v2015_v49  ;;  %1608 = vmatpush.msrb.mxu1 %v1557_v4 }
 0x384   : > { %1676 = vmatpush.msra.mxu3 %v1559_v58  ;;  %1726 = vmatpush.msrb.mxu0 %v2012_v3 }
 0x385   : > { %1654 = vmatpush.msra.mxu2 %v2014_v51  ;;  %1745 = vmatpush.msra.mxu1 %v1560_v56 }
 0x386   : > { %1677 = vmatpush.msra.mxu3 %v1558_v1 }
 0x387   : > { %1655 = vmatpush.msra.mxu2 %v2013_v0  ;;  %1746 = vmatpush.msra.mxu1 %v1559_v58 }
 0x388   : > { %1678 = vmatpush.msra.mxu3 %v1557_v4 }
 0x389   : > { %1656 = vmatpush.msra.mxu2 %v2012_v3  ;;  %1747 = vmatpush.msra.mxu1 %v1558_v1 }
 0x38a   : > { %1815 = vmatpush.msrb.mxu3 %v1560_v56 }
 0x38b   : > { %1793 = vmatpush.msrb.mxu2 %v2015_v49  ;;  %1748 = vmatpush.msra.mxu1 %v1557_v4 }
 0x38c   : > { %1816 = vmatpush.msrb.mxu3 %v1559_v58 }
 0x38d   : > { %1794 = vmatpush.msrb.mxu2 %v2014_v51 }
 0x38e   : > { %1817 = vmatpush.msrb.mxu3 %v1558_v1 }
 0x38f   : > { %1795 = vmatpush.msrb.mxu2 %v2013_v0 }
 0x390   : > { %1818 = vmatpush.msrb.mxu3 %v1557_v4 }
 0x391   : > { %1796 = vmatpush.msrb.mxu2 %v2012_v3 }
 0x3ef   : > { %v1485_v5 = vpop.f32.mrf.mxu0 }
 0x3f0   : > { %v1567_v6 = vrot.slane %v1485_v5, 1  ;;  %2017 = vmatmul.msk.f32.vlgmr.msrb.gmra.mxu1 %vm1568_vm7, %v1485_v5 }
 0x3f2   : > { %2016 = vmatmul.msk.f32.vlgmr.msra.gmra.mxu0 %vm1568_vm7, %v1567_v6 }
 0x3f7   : > { %v1508_v7 = vpop.f32.mrf.mxu1 }
 0x3f8   : > { %v1638_v8 = vrot.slane %v1508_v7, 1  ;;  %2023 = vmatmul.msk.f32.vlgmr.msra.gmra.mxu3 %vm1568_vm7, %v1508_v7 }
 0x3fa   : > { %2022 = vmatmul.msk.f32.vlgmr.msra.gmra.mxu2 %vm1568_vm7, %v1638_v8 }
 0x404   : > { %v1554_v10 = vpop.f32.mrf.mxu3 }
 0x405   : > { %v1531_v11 = vpop.f32.mrf.mxu2  ;;  %v1778_v12 = vrot.slane %v1554_v10, 1  ;;  %2037 = vmatmul.msk.f32.vlgmr.msrb.gmra.mxu3 %vm1568_vm7, %v1554_v10 }
 0x406   : > { %v1708_v13 = vrot.slane %v1531_v11, 1  ;;  %2030 = vmatmul.msk.f32.vlgmr.msra.gmra.mxu1 %vm1568_vm7, %v1531_v11 }
 0x407   : > { %2036 = vmatmul.msk.f32.vlgmr.msrb.gmra.mxu2 %vm1568_vm7, %v1778_v12 }
 0x408   : > { %2029 = vmatmul.msk.f32.vlgmr.msrb.gmra.mxu0 %vm1568_vm7, %v1708_v13 }
 0x46d   : > { %v1610_v14 = vpop.f32.mrf.mxu1 }
 0x46f   : > { %v1588_v15 = vpop.f32.mrf.mxu0 }
 0x470   : > { %v1611_v18 = vadd.f32 %v1610_v14, %v1588_v15 }
 0x472   : > { %v1614_v19 = vadd.f32 %v1613_v16, %v1611_v18 }
 0x474   : > { %v1616_v20 = vsel %vm1615_vm10, %v1614_v19, -inf }
 0x475   : > { %1617 = vmax.xlane.f32.xlu0 %v1616_v20 }
 0x47b   : > { %v1680_v22 = vpop.f32.mrf.mxu3 }
 0x47d   : > { %v1658_v23 = vpop.f32.mrf.mxu2 }
 0x47e   : > { %v1681_v26 = vadd.f32 %v1680_v22, %v1658_v23 }
 0x480   : > { %v1684_v27 = vadd.f32 %v1683_v24, %v1681_v26 }
 0x482   : > { %v1685_v28 = vsel %vm1615_vm10, %v1684_v27, -inf }
 0x483   : > { %1686 = vmax.xlane.f32.xlu0 %v1685_v28  ;;  %v1750_v25 = vpop.f32.mrf.mxu1 }
 0x485   : > { %v1728_v21 = vpop.f32.mrf.mxu0 }
 0x486   : > { %v1751_v30 = vadd.f32 %v1750_v25, %v1728_v21 }
 0x488   : > { %v1754_v31 = vadd.f32 %v1753_v29, %v1751_v30  ;;  %v1820_v32 = vpop.f32.mrf.mxu3 }
 0x48a   : > { %v1755_v33 = vsel %vm1615_vm10, %v1754_v31, -inf  ;;  %v1798_v34 = vpop.f32.mrf.mxu2 }
 0x48b   : > { %1756 = vmax.xlane.f32.xlu1 %v1755_v33  ;;  %v1821_v35 = vadd.f32 %v1820_v32, %v1798_v34 }
 0x48d   : > { %v1824_v37 = vadd.f32 %v1823_v36, %v1821_v35 }
 0x48f   : > { %v1825_v38 = vsel %vm1615_vm10, %v1824_v37, -inf }
 0x493   : > { %1826 = vmax.xlane.f32.xlu1 %v1825_v38 }
 0x4e8   : > { %v1618_v39 = vpop.xlane.xlu0 %1617 }
 0x4e9   : > { %v1619_v40 = vsub.f32 %v1614_v19, %v1618_v39 }
 0x4eb   : > { %v1620_v41 = vmul.f32 1.442695, %v1619_v40 }
 0x4ed   : > { %2108 = vpow2.f32 %v1620_v41 }
 0x4f3   : > { %v2109_v2 = vpop.eup %2108 }
 0x4f4   : > { %v1622_v9 = vsel %vm1615_vm10, %v2109_v2, 0.0 }
 0x4f5   : > { %1623 = vadd.xlane.f32.xlu2 %v1622_v9 }
 0x4f6   : > { %v1687_v42 = vpop.xlane.xlu0 %1686 }
 0x4f7   : > { %v1688_v43 = vsub.f32 %v1684_v27, %v1687_v42 }
 0x4f9   : > { %v1689_v44 = vmul.f32 1.442695, %v1688_v43 }
 0x4fb   : > { %2110 = vpow2.f32 %v1689_v44 }
 0x4fe   : > { %v1757_v17 = vpop.xlane.xlu1 %1756 }
 0x4ff   : > { %v1758_v45 = vsub.f32 %v1754_v31, %v1757_v17 }
 0x501   : > { %v2111_v46 = vpop.eup %2110  ;;  %v1759_v47 = vmul.f32 1.442695, %v1758_v45 }
 0x502   : > { %v1691_v49 = vsel %vm1615_vm10, %v2111_v46, 0.0 }
 0x503   : > { %2112 = vpow2.f32 %v1759_v47  ;;  %1692 = vadd.xlane.f32.xlu2 %v1691_v49 }
 0x506   : > { %v1827_v48 = vpop.xlane.xlu1 %1826 }
 0x507   : > { %v1828_v51 = vsub.f32 %v1824_v37, %v1827_v48 }
 0x509   : > { %v2113_v52 = vpop.eup %2112  ;;  %v1829_v53 = vmul.f32 1.442695, %v1828_v51 }
 0x50a   : > { %v1761_v50 = vsel %vm1615_vm10, %v2113_v52, 0.0 }
 0x50b   : > { %2114 = vpow2.f32 %v1829_v53  ;;  %1762 = vadd.xlane.f32.xlu0 %v1761_v50 }
 0x511   : > { %v2115_v54 = vpop.eup %2114 }
 0x512   : > { %v1831_v55 = vsel %vm1615_vm10, %v2115_v54, 0.0 }
 0x513   : > { %1832 = vadd.xlane.f32.xlu1 %v1831_v55 }
 0x568   : > { %v1624_v56 = vpop.xlane.xlu2 %1623 }
 0x569   : > { %2116 = vlog2.f32 %v1624_v56 }
 0x56f   : > { %v2117_v57 = vpop.eup %2116 }
 0x570   : > { %v1626_v58 = vmul.f32 0.6931472, %v2117_v57 }
 0x572   : > { %v1627_v59 = vsub.f32 %v1619_v40, %v1626_v58 }
 0x574   : > { %1628 = vst.msk [vmem:[%s413_s27] sm:$0x1] %vm1615_vm10, %v1627_v59 }
 0x576   : > { %v1693_v60 = vpop.xlane.xlu2 %1692 }
 0x577   : > { %2118 = vlog2.f32 %v1693_v60 }
 0x57d   : > { %v2119_v61 = vpop.eup %2118 }
 0x57e   : > { %v1695_v62 = vmul.f32 0.6931472, %v2119_v61  ;;  %v1763_v63 = vpop.xlane.xlu0 %1762 }
 0x57f   : > { %2120 = vlog2.f32 %v1763_v63 }
 0x580   : > { %v1696_v0 = vsub.f32 %v1688_v43, %v1695_v62 }
 0x582   : > { %2024 = vst.msk [vmem:[%s413_s27 + $0x1] sm:$0x1] %vm1615_vm10, %v1696_v0 }
 0x585   : > { %v2121_v1 = vpop.eup %2120 }
 0x586   : > { %v1765_v3 = vmul.f32 0.6931472, %v2121_v1  ;;  %v1833_v4 = vpop.xlane.xlu1 %1832 }
 0x587   : > { %2122 = vlog2.f32 %v1833_v4 }
 0x588   : > { %v1766_v5 = vsub.f32 %v1758_v45, %v1765_v3 }
 0x58a   : > { %2031 = vst.msk [vmem:[%s413_s27 + $0x2] sm:$0x1] %vm1615_vm10, %v1766_v5 }
 0x58d   : > { %v2123_v6 = vpop.eup %2122 }
 0x58e   : > { %v1835_v7 = vmul.f32 0.6931472, %v2123_v6 }
 0x590   : > { %v1836_v8 = vsub.f32 %v1828_v51, %v1835_v7 }
 0x592   : > { %2038 = vst.msk [vmem:[%s413_s27 + $0x3] sm:$0x1] %vm1615_vm10, %v1836_v8 }
 0x593 PF: > { %s22_s21 = sadd.s32 1, %s2130_s21  }
 0x594   : > { %p19_p5 = scmp.ge.s32.totalorder %s22_s21, 4  }
 0x596   :  { %21 = sbr.rel (!%p19_p5) target bundleno = 1 (0x1), region = 106 }

</bundles_post_ra>
